<compile_context>
chip_gen: v7x
topology: tpu7x:2x2x1
jax: 0.10.0
libtpu: 0.0.40
codegen_flags: <defaults>
</compile_context>

<pallas_src>
import math
from functools import partial

import jax
import jax.numpy as jnp
from jax.experimental import pallas as pl
from jax.experimental.pallas import tpu as pltpu


def _r3d_attention_kernel(x_ref, wqkv_ref, bqkv_ref, wout_ref, bout_ref, o_ref,
                          qkv_vmem, out_vmem, *,
                          num_heads: int, head_size: int, q_tile: int,
                          approx_recip: bool):
    # x_ref:    (1, C, S)  channel-major activations (f32, straight from NCHW)
    # wqkv_ref: (C, 3C)    lane-packed QKV weight (mxu dtype)
    # bqkv_ref: (1, 3C)    f32 bias
    # wout_ref: (C, C)     output-projection weight (mxu dtype)
    # bout_ref: (1, C)     f32 bias
    # o_ref:    (1, C, S)  f32 output (channel-major, written on last tile)
    # qkv_vmem: (S, 3C)    f32 scratch — full-sequence QKV, persists across tiles
    # out_vmem: (S, C)     f32 scratch — output rows, persists across tiles
    n, h, tq = num_heads, head_size, q_tile
    C = x_ref.shape[1]
    S = x_ref.shape[2]
    cdt = wqkv_ref.dtype                       # MXU operand dtype
    t = pl.program_id(1)
    n_qt = pl.num_programs(1)

    # ---- Phase 1 (first query tile of each batch): full-sequence QKV --------
    # One (S,C)@(C,3C) matmul; the NCHW->(S,C) transpose is fused here (f32
    # XLU transpose — the XLU is otherwise idle in this kernel).
    @pl.when(t == 0)
    def _():
        x_s = jnp.transpose(x_ref[0], (1, 0))                       # (S, C) f32
        qkv = jnp.dot(x_s.astype(cdt), wqkv_ref[...],
                      preferred_element_type=jnp.float32) + bqkv_ref[...]
        qkv_vmem[...] = qkv                                          # (S, 3C) f32

    # ---- Phase 2: attention for this query tile -----------------------------
    start = pl.multiple_of(t * tq, tq)
    qkv_all = qkv_vmem[...]                                          # (S, 3C) f32
    q_rows = qkv_vmem[pl.ds(start, tq), :]                           # (tq, 3C) f32

    scale = jnp.float32(1.0 / math.sqrt(h))
    row = start + jax.lax.broadcasted_iota(jnp.int32, (tq, S), 0)    # global q idx
    col = jax.lax.broadcasted_iota(jnp.int32, (tq, S), 1)
    above_diag = col > row                                           # soft causal mask

    z_heads = []
    for i in range(n):          # static unroll; 8-lane extraction = cheap XLU work
        q_i = q_rows[:, i * h:(i + 1) * h].astype(cdt)               # (tq, h)
        k_i = qkv_all[:, C + i * h:C + (i + 1) * h].astype(cdt)      # (S, h)
        v_i = qkv_all[:, 2 * C + i * h:2 * C + (i + 1) * h].astype(cdt)
        # Contract on the trailing head axis of both (implicit k transpose is
        # accepted: the XLU slot is idle here).
        s_i = jax.lax.dot_general(q_i, k_i, (((1,), (1,)), ((), ())),
                                  preferred_element_type=jnp.float32) * scale
        s_i = jnp.where(above_diag, s_i - jnp.float32(10000.0), s_i)
        # Numerically stable softmax in f32.
        m_i = jnp.max(s_i, axis=-1, keepdims=True)
        e_i = jnp.exp(s_i - m_i)
        d_i = jnp.sum(e_i, axis=-1, keepdims=True)
        if approx_recip:        # EUP approx reciprocal — bf16 path only
            p_i = e_i * pl.reciprocal(d_i, approx=True)
        else:                   # exact divide on the f32 "exact math" path
            p_i = e_i / d_i
        z_heads.append(jnp.dot(p_i.astype(cdt), v_i,
                               preferred_element_type=jnp.float32))  # (tq, h)

    # Lane-repack the heads (idle-XLU shuffles) and do ONE K=n*h out-projection.
    z = jnp.concatenate(z_heads, axis=-1).astype(cdt)                # (tq, C)
    out_rows = jnp.dot(z, wout_ref[...],
                       preferred_element_type=jnp.float32) + bout_ref[...]
    out_vmem[pl.ds(start, tq), :] = out_rows                         # (tq, C) f32

    # ---- Phase 3 (last query tile): fused (S,C)->(C,S) transpose + store ----
    @pl.when(t == n_qt - 1)
    def _():
        o_ref[0] = jnp.transpose(out_vmem[...], (1, 0)).astype(o_ref.dtype)


def prepare_r3d_params(wqkv, bqkv, wout, bout, *, mxu_dtype=jnp.bfloat16):
    """One-time parameter prep (call OUTSIDE the jitted forward and cache).

    Only a dtype cast + 2-D bias layout — the QKV weight stays in its original
    lane-packed (C, 3C) layout, so no per-call weight transpose kernels.
    """
    return (jnp.asarray(wqkv, mxu_dtype),                  # (C, 3C)
            jnp.asarray(bqkv, jnp.float32).reshape(1, -1),  # (1, 3C)
            jnp.asarray(wout, mxu_dtype),                   # (C, C)
            jnp.asarray(bout, jnp.float32).reshape(1, -1))  # (1, C)


@partial(jax.jit, static_argnames=("num_heads", "q_tile"))
def r3d_attention(x_nchw, wqkv_p, bqkv_p, wout_p, bout_p, *,
                  num_heads: int, q_tile: int = 32):
    """x_nchw: (B, C, W, H) float32.  Params from prepare_r3d_params().

    Returns (B, C, W, H) float32.
    """
    B, C, W, H = x_nchw.shape
    S = W * H
    h = C // num_heads

    # Query-tile size: several grid steps per core (v7x has 2 TCs), must be a
    # multiple of 8 and divide S; fall back to a single tile otherwise.
    q_tile = min(q_tile, S)
    if (S % q_tile) != 0 or (q_tile % 8) != 0:
        q_tile = S
    n_qt = S // q_tile

    # Free trailing-dim merge; the permute lives inside the kernel.
    x_cs = x_nchw.reshape(B, C, S)

    kernel = partial(_r3d_attention_kernel,
                     num_heads=num_heads, head_size=h, q_tile=q_tile,
                     approx_recip=(wqkv_p.dtype != jnp.float32))

    out_cs = pl.pallas_call(
        kernel,
        out_shape=jax.ShapeDtypeStruct((B, C, S), jnp.float32),
        grid_spec=pltpu.PrefetchScalarGridSpec(
            num_scalar_prefetch=0,
            grid=(B, n_qt),                      # 2 x 2 = 4 steps -> 2/core on v7x
            in_specs=[
                pl.BlockSpec((1, C, S), lambda b, t: (b, 0, 0)),    # x (re-used over t)
                pl.BlockSpec((C, 3 * C), lambda b, t: (0, 0)),      # Wqkv (lane-packed)
                pl.BlockSpec((1, 3 * C), lambda b, t: (0, 0)),      # bqkv
                pl.BlockSpec((C, C), lambda b, t: (0, 0)),          # Wout
                pl.BlockSpec((1, C), lambda b, t: (0, 0)),          # bout
            ],
            out_specs=pl.BlockSpec((1, C, S), lambda b, t: (b, 0, 0)),
            scratch_shapes=[
                pltpu.VMEM((S, 3 * C), jnp.float32),   # per-batch QKV activations
                pltpu.VMEM((S, C), jnp.float32),       # per-batch output rows
            ],
        ),
        compiler_params=pltpu.CompilerParams(
            dimension_semantics=("parallel", "arbitrary"),
            # <= ~48-56 MiB keeps headroom on v7x's 64 MiB VMEM; on 128 MiB
            # parts (v5e/v6e) this can be raised toward ~96 MiB for larger S.
            vmem_limit_bytes=48 * 1024 * 1024,
        ),
    )(x_cs, wqkv_p, bqkv_p, wout_p, bout_p)

    return out_cs.reshape(B, C, W, H)            # free reshape back to NCHW


def _reference(x_nchw, wqkv, bqkv, wout, bout, *, num_heads: int):
    """Pure-JAX f32 reference mirroring the PyTorch forward (eval mode)."""
    B, C, W, H = x_nchw.shape
    S = W * H
    hd = C // num_heads
    x = jnp.transpose(x_nchw, (0, 2, 3, 1)).reshape(B, S, C)
    qkv = x @ wqkv + bqkv                                   # (B, S, 3C)
    qkv = qkv.reshape(B, S, 3, num_heads, hd)
    q = jnp.transpose(qkv[:, :, 0], (0, 2, 1, 3))           # (B, n, S, h)
    k = jnp.transpose(qkv[:, :, 1], (0, 2, 1, 3))
    v = jnp.transpose(qkv[:, :, 2], (0, 2, 1, 3))
    score = jnp.einsum('bnqh,bnkh->bnqk', q, k) / math.sqrt(hd)
    mask = 10000.0 * jnp.triu(jnp.ones((S, S), jnp.float32), k=1)
    prob = jax.nn.softmax(score - mask, axis=-1)
    z = jnp.einsum('bnqk,bnkh->bqnh', prob, v).reshape(B, S, C)
    out = z @ wout + bout
    return jnp.transpose(out.reshape(B, W, H, C), (0, 3, 1, 2))


if __name__ == "__main__":
    # Small shapes: batch=2, hidden(channels)=32, spatial 8x8 -> seq=64, heads=4.
    B, C, W, H = 2, 32, 8, 8
    NUM_HEADS = 4

    key = jax.random.PRNGKey(0)
    kx, kw1, kb1, kw2, kb2 = jax.random.split(key, 5)

    x = jax.random.normal(kx, (B, C, W, H), dtype=jnp.float32)
    # Deterministic synthetic parameters; W stored as (in, out) so y = x @ W + b.
    wqkv = jax.random.normal(kw1, (C, 3 * C), dtype=jnp.float32) * 0.05
    bqkv = jax.random.normal(kb1, (3 * C,), dtype=jnp.float32) * 0.05
    wout = jax.random.normal(kw2, (C, C), dtype=jnp.float32) * 0.05
    bout = jax.random.normal(kb2, (C,), dtype=jnp.float32) * 0.05

    ref = _reference(x, wqkv, bqkv, wout, bout, num_heads=NUM_HEADS)

    # Exact-math path: f32 MXU operands, exact reciprocal -> tight check.
    params_f32 = prepare_r3d_params(wqkv, bqkv, wout, bout, mxu_dtype=jnp.float32)
    out_f32 = jax.block_until_ready(
        r3d_attention(x, *params_f32, num_heads=NUM_HEADS))
    assert out_f32.shape == (B, C, W, H)
    assert float(jnp.max(jnp.abs(out_f32 - ref))) < 2e-3, "f32 kernel mismatch vs reference"

    # Default perf path: bf16 MXU operands, f32 accumulation + f32 softmax,
    # EUP approx reciprocal.  Params prepared ONCE, outside the jitted forward.
    params_bf16 = prepare_r3d_params(wqkv, bqkv, wout, bout)
    out_bf16 = jax.block_until_ready(
        r3d_attention(x, *params_bf16, num_heads=NUM_HEADS))
    assert out_bf16.shape == (B, C, W, H)
    assert float(jnp.max(jnp.abs(out_bf16 - ref))) < 2e-2, "bf16 kernel mismatch vs reference"

    print("KERNEL_OK")
</pallas_src>

<mosaic_0001>
module attributes {stable_mosaic.version = 11 : i64} {
  func.func @_r3d_attention_kernel(%arg0: i32, %arg1: i32, %arg2: memref<1x32x64xf32, #tpu.memory_space<vmem>>, %arg3: memref<32x96xf32, #tpu.memory_space<vmem>>, %arg4: memref<1x96xf32, #tpu.memory_space<vmem>>, %arg5: memref<32x32xf32, #tpu.memory_space<vmem>>, %arg6: memref<1x32xf32, #tpu.memory_space<vmem>>, %arg7: memref<1x32x64xf32, #tpu.memory_space<vmem>>, %arg8: memref<64x96xf32, #tpu.memory_space<vmem>>, %arg9: memref<64x32xf32, #tpu.memory_space<vmem>>) attributes {dimension_semantics = [#tpu.dimension_semantics<parallel>, #tpu.dimension_semantics<arbitrary>], iteration_bounds = array<i64: 2, 2>, scalar_prefetch = 0 : i64, scratch_operands = 2 : i64, tpu.core_type = #tpu.core_type<tc>, window_params = [{transform_indices = @transform_0, window_bounds = array<i64: 1, 32, 64>}, {pipeline_mode = #tpu.pipeline_mode<synchronous>, transform_indices = @transform_1, window_bounds = array<i64: 32, 96>}, {pipeline_mode = #tpu.pipeline_mode<synchronous>, transform_indices = @transform_2, window_bounds = array<i64: 1, 96>}, {pipeline_mode = #tpu.pipeline_mode<synchronous>, transform_indices = @transform_3, window_bounds = array<i64: 32, 32>}, {pipeline_mode = #tpu.pipeline_mode<synchronous>, transform_indices = @transform_4, window_bounds = array<i64: 1, 32>}, {transform_indices = @transform_5, window_bounds = array<i64: 1, 32, 64>}]} {
    %c0_i32 = arith.constant 0 : i32
    %0 = arith.cmpi eq, %arg1, %c0_i32 : i32
    %1 = arith.extui %0 : i1 to i32
    %c0_i32_0 = arith.constant 0 : i32
    %2 = arith.cmpi ne, %1, %c0_i32_0 : i32
    scf.if %2 {
      %c0_33 = arith.constant 0 : index
      %c0_34 = arith.constant 0 : index
      %c0_35 = arith.constant 0 : index
      %100 = vector.load %arg2[%c0_33, %c0_34, %c0_35] : memref<1x32x64xf32, #tpu.memory_space<vmem>>, vector<1x32x64xf32>
      %101 = vector.shape_cast %100 : vector<1x32x64xf32> to vector<32x64xf32>
      %102 = tpu.transpose %101, [1, 0] : vector<32x64xf32> -> vector<64x32xf32>
      %c0_36 = arith.constant 0 : index
      %c0_37 = arith.constant 0 : index
      %103 = vector.load %arg3[%c0_36, %c0_37] : memref<32x96xf32, #tpu.memory_space<vmem>>, vector<32x96xf32>
      %cst_38 = arith.constant dense<0.000000e+00> : vector<64x96xf32>
      %104 = tpu.matmul %102, %103, %cst_38 {dimension_numbers = #tpu.dot_dimension_numbers<[1], [0], [0], [1], [0, 0, 1, 1], [], []>} : vector<64x32xf32>, vector<32x96xf32>, vector<64x96xf32> -> vector<64x96xf32>
      %c0_39 = arith.constant 0 : index
      %c0_40 = arith.constant 0 : index
      %105 = vector.load %arg4[%c0_39, %c0_40] : memref<1x96xf32, #tpu.memory_space<vmem>>, vector<1x96xf32>
      %106 = vector.broadcast %105 : vector<1x96xf32> to vector<64x96xf32>
      %107 = arith.addf %104, %106 : vector<64x96xf32>
      %c0_41 = arith.constant 0 : index
      %c0_42 = arith.constant 0 : index
      %108 = vector.load %arg8[%c0_41, %c0_42] : memref<64x96xf32, #tpu.memory_space<vmem>>, vector<64x96xf32>
      tpu.vector_store %arg8[%c0_41, %c0_42], %107 {strides = array<i32>} : memref<64x96xf32, #tpu.memory_space<vmem>>, vector<64x96xf32>,
    } else {
    }
    %c32_i32 = arith.constant 32 : i32
    %3 = arith.muli %arg1, %c32_i32 : i32
    %4 = tpu.assume_multiple %3, 32 : i32
    %c0 = arith.constant 0 : index
    %c0_1 = arith.constant 0 : index
    %5 = vector.load %arg8[%c0, %c0_1] : memref<64x96xf32, #tpu.memory_space<vmem>>, vector<64x96xf32>
    %6 = arith.index_cast %4 : i32 to index
    %c0_2 = arith.constant 0 : index
    %7 = vector.load %arg8[%6, %c0_2] : memref<64x96xf32, #tpu.memory_space<vmem>>, vector<32x96xf32>
    %8 = tpu.iota {dimensions = array<i32: 0>} : vector<32x64xi32>
    %9 = vector.broadcast %4 : i32 to vector<32x64xi32>
    %10 = arith.addi %9, %8 : vector<32x64xi32>
    %11 = tpu.iota {dimensions = array<i32: 1>} : vector<32x64xi32>
    %12 = arith.cmpi sgt, %11, %10 : vector<32x64xi32>
    %13 = vector.extract_strided_slice %7 {offsets = [0, 0], sizes = [32, 8], strides = [1, 1]} : vector<32x96xf32> to vector<32x8xf32>
    %14 = vector.extract_strided_slice %5 {offsets = [0, 32], sizes = [64, 8], strides = [1, 1]} : vector<64x96xf32> to vector<64x8xf32>
    %15 = vector.extract_strided_slice %5 {offsets = [0, 64], sizes = [64, 8], strides = [1, 1]} : vector<64x96xf32> to vector<64x8xf32>
    %cst = arith.constant dense<0.000000e+00> : vector<32x64xf32>
    %16 = tpu.matmul %13, %14, %cst {dimension_numbers = #tpu.dot_dimension_numbers<[1], [1], [0], [0], [0, 0, 1, 0], [], []>} : vector<32x8xf32>, vector<64x8xf32>, vector<32x64xf32> -> vector<32x64xf32>
    %cst_3 = arith.constant 0.353553385 : f32
    %17 = vector.broadcast %cst_3 : f32 to vector<32x64xf32>
    %18 = arith.mulf %16, %17 : vector<32x64xf32>
    %cst_4 = arith.constant 1.000000e+04 : f32
    %19 = vector.broadcast %cst_4 : f32 to vector<32x64xf32>
    %20 = arith.subf %18, %19 : vector<32x64xf32>
    %21 = arith.select %12, %20, %18 : vector<32x64xi1>, vector<32x64xf32>
    %cst_5 = arith.constant dense<0xFF800000> : vector<32xf32>
    %22 = vector.multi_reduction <maximumf>, %21, %cst_5 [1] : vector<32x64xf32> to vector<32xf32>
    %23 = vector.shape_cast %22 : vector<32xf32> to vector<32x1xf32>
    %24 = vector.broadcast %23 : vector<32x1xf32> to vector<32x64xf32>
    %25 = arith.subf %21, %24 : vector<32x64xf32>
    %26 = math.exp %25 : vector<32x64xf32>
    %cst_6 = arith.constant dense<0.000000e+00> : vector<32xf32>
    %27 = vector.multi_reduction <add>, %26, %cst_6 [1] : vector<32x64xf32> to vector<32xf32>
    %28 = vector.shape_cast %27 : vector<32xf32> to vector<32x1xf32>
    %29 = vector.broadcast %28 : vector<32x1xf32> to vector<32x64xf32>
    %30 = arith.divf %26, %29 : vector<32x64xf32>
    %cst_7 = arith.constant dense<0.000000e+00> : vector<32x8xf32>
    %31 = tpu.matmul %30, %15, %cst_7 {dimension_numbers = #tpu.dot_dimension_numbers<[1], [0], [0], [1], [0, 0, 1, 1], [], []>} : vector<32x64xf32>, vector<64x8xf32>, vector<32x8xf32> -> vector<32x8xf32>
    %32 = vector.extract_strided_slice %7 {offsets = [0, 8], sizes = [32, 8], strides = [1, 1]} : vector<32x96xf32> to vector<32x8xf32>
    %33 = vector.extract_strided_slice %5 {offsets = [0, 40], sizes = [64, 8], strides = [1, 1]} : vector<64x96xf32> to vector<64x8xf32>
    %34 = vector.extract_strided_slice %5 {offsets = [0, 72], sizes = [64, 8], strides = [1, 1]} : vector<64x96xf32> to vector<64x8xf32>
    %cst_8 = arith.constant dense<0.000000e+00> : vector<32x64xf32>
    %35 = tpu.matmul %32, %33, %cst_8 {dimension_numbers = #tpu.dot_dimension_numbers<[1], [1], [0], [0], [0, 0, 1, 0], [], []>} : vector<32x8xf32>, vector<64x8xf32>, vector<32x64xf32> -> vector<32x64xf32>
    %cst_9 = arith.constant 0.353553385 : f32
    %36 = vector.broadcast %cst_9 : f32 to vector<32x64xf32>
    %37 = arith.mulf %35, %36 : vector<32x64xf32>
    %cst_10 = arith.constant 1.000000e+04 : f32
    %38 = vector.broadcast %cst_10 : f32 to vector<32x64xf32>
    %39 = arith.subf %37, %38 : vector<32x64xf32>
    %40 = arith.select %12, %39, %37 : vector<32x64xi1>, vector<32x64xf32>
    %cst_11 = arith.constant dense<0xFF800000> : vector<32xf32>
    %41 = vector.multi_reduction <maximumf>, %40, %cst_11 [1] : vector<32x64xf32> to vector<32xf32>
    %42 = vector.shape_cast %41 : vector<32xf32> to vector<32x1xf32>
    %43 = vector.broadcast %42 : vector<32x1xf32> to vector<32x64xf32>
    %44 = arith.subf %40, %43 : vector<32x64xf32>
    %45 = math.exp %44 : vector<32x64xf32>
    %cst_12 = arith.constant dense<0.000000e+00> : vector<32xf32>
    %46 = vector.multi_reduction <add>, %45, %cst_12 [1] : vector<32x64xf32> to vector<32xf32>
    %47 = vector.shape_cast %46 : vector<32xf32> to vector<32x1xf32>
    %48 = vector.broadcast %47 : vector<32x1xf32> to vector<32x64xf32>
    %49 = arith.divf %45, %48 : vector<32x64xf32>
    %cst_13 = arith.constant dense<0.000000e+00> : vector<32x8xf32>
    %50 = tpu.matmul %49, %34, %cst_13 {dimension_numbers = #tpu.dot_dimension_numbers<[1], [0], [0], [1], [0, 0, 1, 1], [], []>} : vector<32x64xf32>, vector<64x8xf32>, vector<32x8xf32> -> vector<32x8xf32>
    %51 = vector.extract_strided_slice %7 {offsets = [0, 16], sizes = [32, 8], strides = [1, 1]} : vector<32x96xf32> to vector<32x8xf32>
    %52 = vector.extract_strided_slice %5 {offsets = [0, 48], sizes = [64, 8], strides = [1, 1]} : vector<64x96xf32> to vector<64x8xf32>
    %53 = vector.extract_strided_slice %5 {offsets = [0, 80], sizes = [64, 8], strides = [1, 1]} : vector<64x96xf32> to vector<64x8xf32>
    %cst_14 = arith.constant dense<0.000000e+00> : vector<32x64xf32>
    %54 = tpu.matmul %51, %52, %cst_14 {dimension_numbers = #tpu.dot_dimension_numbers<[1], [1], [0], [0], [0, 0, 1, 0], [], []>} : vector<32x8xf32>, vector<64x8xf32>, vector<32x64xf32> -> vector<32x64xf32>
    %cst_15 = arith.constant 0.353553385 : f32
    %55 = vector.broadcast %cst_15 : f32 to vector<32x64xf32>
    %56 = arith.mulf %54, %55 : vector<32x64xf32>
    %cst_16 = arith.constant 1.000000e+04 : f32
    %57 = vector.broadcast %cst_16 : f32 to vector<32x64xf32>
    %58 = arith.subf %56, %57 : vector<32x64xf32>
    %59 = arith.select %12, %58, %56 : vector<32x64xi1>, vector<32x64xf32>
    %cst_17 = arith.constant dense<0xFF800000> : vector<32xf32>
    %60 = vector.multi_reduction <maximumf>, %59, %cst_17 [1] : vector<32x64xf32> to vector<32xf32>
    %61 = vector.shape_cast %60 : vector<32xf32> to vector<32x1xf32>
    %62 = vector.broadcast %61 : vector<32x1xf32> to vector<32x64xf32>
    %63 = arith.subf %59, %62 : vector<32x64xf32>
    %64 = math.exp %63 : vector<32x64xf32>
    %cst_18 = arith.constant dense<0.000000e+00> : vector<32xf32>
    %65 = vector.multi_reduction <add>, %64, %cst_18 [1] : vector<32x64xf32> to vector<32xf32>
    %66 = vector.shape_cast %65 : vector<32xf32> to vector<32x1xf32>
    %67 = vector.broadcast %66 : vector<32x1xf32> to vector<32x64xf32>
    %68 = arith.divf %64, %67 : vector<32x64xf32>
    %cst_19 = arith.constant dense<0.000000e+00> : vector<32x8xf32>
    %69 = tpu.matmul %68, %53, %cst_19 {dimension_numbers = #tpu.dot_dimension_numbers<[1], [0], [0], [1], [0, 0, 1, 1], [], []>} : vector<32x64xf32>, vector<64x8xf32>, vector<32x8xf32> -> vector<32x8xf32>
    %70 = vector.extract_strided_slice %7 {offsets = [0, 24], sizes = [32, 8], strides = [1, 1]} : vector<32x96xf32> to vector<32x8xf32>
    %71 = vector.extract_strided_slice %5 {offsets = [0, 56], sizes = [64, 8], strides = [1, 1]} : vector<64x96xf32> to vector<64x8xf32>
    %72 = vector.extract_strided_slice %5 {offsets = [0, 88], sizes = [64, 8], strides = [1, 1]} : vector<64x96xf32> to vector<64x8xf32>
    %cst_20 = arith.constant dense<0.000000e+00> : vector<32x64xf32>
    %73 = tpu.matmul %70, %71, %cst_20 {dimension_numbers = #tpu.dot_dimension_numbers<[1], [1], [0], [0], [0, 0, 1, 0], [], []>} : vector<32x8xf32>, vector<64x8xf32>, vector<32x64xf32> -> vector<32x64xf32>
    %cst_21 = arith.constant 0.353553385 : f32
    %74 = vector.broadcast %cst_21 : f32 to vector<32x64xf32>
    %75 = arith.mulf %73, %74 : vector<32x64xf32>
    %cst_22 = arith.constant 1.000000e+04 : f32
    %76 = vector.broadcast %cst_22 : f32 to vector<32x64xf32>
    %77 = arith.subf %75, %76 : vector<32x64xf32>
    %78 = arith.select %12, %77, %75 : vector<32x64xi1>, vector<32x64xf32>
    %cst_23 = arith.constant dense<0xFF800000> : vector<32xf32>
    %79 = vector.multi_reduction <maximumf>, %78, %cst_23 [1] : vector<32x64xf32> to vector<32xf32>
    %80 = vector.shape_cast %79 : vector<32xf32> to vector<32x1xf32>
    %81 = vector.broadcast %80 : vector<32x1xf32> to vector<32x64xf32>
    %82 = arith.subf %78, %81 : vector<32x64xf32>
    %83 = math.exp %82 : vector<32x64xf32>
    %cst_24 = arith.constant dense<0.000000e+00> : vector<32xf32>
    %84 = vector.multi_reduction <add>, %83, %cst_24 [1] : vector<32x64xf32> to vector<32xf32>
    %85 = vector.shape_cast %84 : vector<32xf32> to vector<32x1xf32>
    %86 = vector.broadcast %85 : vector<32x1xf32> to vector<32x64xf32>
    %87 = arith.divf %83, %86 : vector<32x64xf32>
    %cst_25 = arith.constant dense<0.000000e+00> : vector<32x8xf32>
    %88 = tpu.matmul %87, %72, %cst_25 {dimension_numbers = #tpu.dot_dimension_numbers<[1], [0], [0], [1], [0, 0, 1, 1], [], []>} : vector<32x64xf32>, vector<64x8xf32>, vector<32x8xf32> -> vector<32x8xf32>
    %89 = tpu.concatenate %31, %50, %69, %88 in 1 : vector<32x8xf32>, vector<32x8xf32>, vector<32x8xf32>, vector<32x8xf32> -> vector<32x32xf32>
    %c0_26 = arith.constant 0 : index
    %c0_27 = arith.constant 0 : index
    %90 = vector.load %arg5[%c0_26, %c0_27] : memref<32x32xf32, #tpu.memory_space<vmem>>, vector<32x32xf32>
    %cst_28 = arith.constant dense<0.000000e+00> : vector<32x32xf32>
    %91 = tpu.matmul %89, %90, %cst_28 {dimension_numbers = #tpu.dot_dimension_numbers<[1], [0], [0], [1], [0, 0, 1, 1], [], []>} : vector<32x32xf32>, vector<32x32xf32>, vector<32x32xf32> -> vector<32x32xf32>
    %c0_29 = arith.constant 0 : index
    %c0_30 = arith.constant 0 : index
    %92 = vector.load %arg6[%c0_29, %c0_30] : memref<1x32xf32, #tpu.memory_space<vmem>>, vector<1x32xf32>
    %93 = vector.broadcast %92 : vector<1x32xf32> to vector<32x32xf32>
    %94 = arith.addf %91, %93 : vector<32x32xf32>
    %95 = arith.index_cast %4 : i32 to index
    %c0_31 = arith.constant 0 : index
    %96 = vector.load %arg9[%95, %c0_31] : memref<64x32xf32, #tpu.memory_space<vmem>>, vector<32x32xf32>
    tpu.vector_store %arg9[%95, %c0_31], %94 {strides = array<i32>} : memref<64x32xf32, #tpu.memory_space<vmem>>, vector<32x32xf32>,
    %c1_i32 = arith.constant 1 : i32
    %97 = arith.cmpi eq, %arg1, %c1_i32 : i32
    %98 = arith.extui %97 : i1 to i32
    %c0_i32_32 = arith.constant 0 : i32
    %99 = arith.cmpi ne, %98, %c0_i32_32 : i32
    scf.if %99 {
      %c0_33 = arith.constant 0 : index
      %c0_34 = arith.constant 0 : index
      %100 = vector.load %arg9[%c0_33, %c0_34] : memref<64x32xf32, #tpu.memory_space<vmem>>, vector<64x32xf32>
      %101 = tpu.transpose %100, [1, 0] : vector<64x32xf32> -> vector<32x64xf32>
      %c0_35 = arith.constant 0 : index
      %c0_36 = arith.constant 0 : index
      %c0_37 = arith.constant 0 : index
      %102 = vector.load %arg7[%c0_35, %c0_36, %c0_37] : memref<1x32x64xf32, #tpu.memory_space<vmem>>, vector<1x32x64xf32>
      %103 = vector.shape_cast %102 : vector<1x32x64xf32> to vector<32x64xf32>
      %104 = vector.shape_cast %101 : vector<32x64xf32> to vector<1x32x64xf32>
      tpu.vector_store %arg7[%c0_35, %c0_36, %c0_37], %104 {strides = array<i32>} : memref<1x32x64xf32, #tpu.memory_space<vmem>>, vector<1x32x64xf32>,
    } else {
    }
    return
  }
  func.func @transform_0(%arg0: i32, %arg1: i32) -> (i32, i32, i32) {
    %c0_i32 = arith.constant 0 : i32
    %c0_i32_0 = arith.constant 0 : i32
    %c0_i32_1 = arith.constant 0 : i32
    return %arg0, %c0_i32, %c0_i32_0 : i32, i32, i32
  }
  func.func @transform_1(%arg0: i32, %arg1: i32) -> (i32, i32) {
    %c0_i32 = arith.constant 0 : i32
    %c0_i32_0 = arith.constant 0 : i32
    %c0_i32_1 = arith.constant 0 : i32
    return %c0_i32, %c0_i32_0 : i32, i32
  }
  func.func @transform_2(%arg0: i32, %arg1: i32) -> (i32, i32) {
    %c0_i32 = arith.constant 0 : i32
    %c0_i32_0 = arith.constant 0 : i32
    %c0_i32_1 = arith.constant 0 : i32
    return %c0_i32, %c0_i32_0 : i32, i32
  }
  func.func @transform_3(%arg0: i32, %arg1: i32) -> (i32, i32) {
    %c0_i32 = arith.constant 0 : i32
    %c0_i32_0 = arith.constant 0 : i32
    %c0_i32_1 = arith.constant 0 : i32
    return %c0_i32, %c0_i32_0 : i32, i32
  }
  func.func @transform_4(%arg0: i32, %arg1: i32) -> (i32, i32) {
    %c0_i32 = arith.constant 0 : i32
    %c0_i32_0 = arith.constant 0 : i32
    %c0_i32_1 = arith.constant 0 : i32
    return %c0_i32, %c0_i32_0 : i32, i32
  }
  func.func @transform_5(%arg0: i32, %arg1: i32) -> (i32, i32, i32) {
    %c0_i32 = arith.constant 0 : i32
    %c0_i32_0 = arith.constant 0 : i32
    %c0_i32_1 = arith.constant 0 : i32
    return %arg0, %c0_i32, %c0_i32_0 : i32, i32, i32
  }
}

</mosaic_0001>

<bundles_post_ra>
// kernel: r3d_attention.1
= control target key start
LH: loop header
LB: loop body
LE: loop exit
PB: predicated region body
PF: predicated region fallthrough
CT: control target
= control target key end

     0   :  { %s2989_s18 = smov 0   ;;  %s2991_s19 = smov 0   ;;  %s3456_s0 = inlined_call_operand.vmem [shape: f32[2,32,64], index: 0, kind: input, shape index: {}]   ;;  %s3457_s1 = inlined_call_operand.vmem [shape: f32[32,96], index: 1, kind: input, shape index: {}]   ;;  %s3458_s2 = inlined_call_operand.vmem [shape: f32[1,96], index: 2, kind: input, shape index: {}]   ;;  %s3459_s3 = inlined_call_operand.vmem [shape: f32[32,32], index: 3, kind: input, shape index: {}]   ;;  %s3460_s4 = inlined_call_operand.vmem [shape: f32[1,32], index: 4, kind: input, shape index: {}]   ;;  %s3461_s5 = inlined_call_operand.vmem [shape: f32[2,32,64], index: 5, kind: output, shape index: {}]  }
   0x1   :  { %s2993_s20 = smov 0   ;;  %s2995_s21 = smov 0  }
   0x2   :  { %s2997_s22 = smov 0  }
   0x3 LB: > { %s24_s23 = sadd.s32 1, %s2935_s20  ;;  %s27_s24 = sadd.s32 1, %s2939_s21  ;;  %s2943_s22 = sphi %s2997_s22, %s15_s22   ;;  %s2939_s21 = sphi %s2995_s21, %s3467_s21   ;;  %s2935_s20 = sphi %s2993_s20, %s3466_s20   ;;  %s2931_s19 = sphi %s2991_s19, %s3465_s19   ;;  %s2927_s18 = sphi %s2989_s18, %s3464_s18  }
   0x4   : > { %p25_p0 = scmp.ge.s32.totalorder %s24_s23, 2  ;;  %p2001_p1 = scmp.ge.s32.totalorder %s2943_s22, 1 }
   0x5   : > { %p199_p2 = scmp.lt.s32.totalorder %s2943_s22, 5 }
   0x6   : > { %s3469_s23 = smov (%p25_p0, %s24_s23), 0  ;;  %s3471_s24 = smov (!%p25_p0, %s27_s24), %s2939_s21 }
   0x7   : > { %p200_p3 = pnand %p2001_p1, %p199_p2  ;;  %p29_p4 = scmp.ge.s32.totalorder %s3471_s24, 2 }
   0x8   : > { %p227_p5 = scmp.lt.s32.totalorder (!%p200_p3), %s2931_s19, 1  ;;  %p2006_p6 = scmp.ne.s32.totalorder (!%p200_p3), %s2927_s18, 0 }
   0x9   : > { %s3473_s24 = smov (%p29_p4, %s3471_s24), 0  ;;  %203 = sbr.rel (%p200_p3) target bundleno = 3615 (0xe1f), region = 40 }
  0x10   : > { %s3475_s19 = smov (!%p227_p5, %s2931_s19), 1  ;;  %240 = sbr.rel (%p2006_p6) target bundleno = 393 (0x189), region = 44 }
  0x11   : > { %s2105_s25 = sshll.u32 %s3475_s19, 5  ;;  %v277_v1 = vld [vmem:[%s3457_s1] sm:$0xff] (!%p2006_p6)  ;;  %v278_v2 = vld [vmem:[%s3457_s1 + $0x8] sm:$0xff] (!%p2006_p6)  ;;  %v279_v5 = vld [vmem:[%s3457_s1 + $0x10] sm:$0xff] (!%p2006_p6)  ;;  %vm288_vm0 = vcmask (!%p2006_p6), 261120   ;;  %vm418_vm1 = vcmask (!%p2006_p6), 785408  }
  0x12   : > { %s231_s28 = scalar_lea.vmem %s3456_s0, %s2105_s25  ;;  %s3027_s6 = scalar_lea.vmem %s3461_s5, %s2105_s25  ;;  %v2433_v4 = vpack.c.bf16 (!%p2006_p6), %v278_v2, %v277_v1  ;;  %v280_v6 = vld [vmem:[%s3457_s1 + $0x18] sm:$0xff] (!%p2006_p6)  ;;  %v2007_v18 = vld [vmem:[%s3458_s2] ss:$0 sm:$0xff] (!%p2006_p6) }
  0x13   : > { %v241_v0 = vld [vmem:[%s231_s28] sm:$0xff] (!%p2006_p6)  ;;  %v242_v3 = vld [vmem:[%s231_s28 + $0x8] sm:$0xff] (!%p2006_p6)  ;;  %v2437_v7 = vpack.c.bf16 (!%p2006_p6), %v280_v6, %v279_v5  ;;  %v243_v8 = vld [vmem:[%s231_s28 + $0x10] sm:$0xff] (!%p2006_p6) }
  0x14   : > { %245 = vxpose.xlu0.b32.start [1/4] (short) (narrow) (!%p2006_p6), %v241_v0, 64  ;;  %2434 = vmatprep.subr.bf16.mxu0 (!%p2006_p6), %v2433_v4  ;;  %v244_v9 = vld [vmem:[%s231_s28 + $0x18] sm:$0xff] (!%p2006_p6) }
  0x15   : > { %2609 = vmatprep.subr.bf16.mxu1 (!%p2006_p6), %v2433_v4  ;;  %2436 = vmatpush3.bf16.msra.mxu0 (!%p2006_p6), %v2433_v4 }
  0x16   : > { %2438 = vmatprep.subr.bf16.mxu0 (!%p2006_p6), %v2437_v7  ;;  %2611 = vmatpush3.bf16.msra.mxu1 (!%p2006_p6), %v2433_v4 }
  0x17   : > { %2610 = vmatprep.subr.bf16.mxu1 %v2437_v7 }
  0x18   : > { %246 = vxpose.xlu0.b32.cont [2/4] (short) (narrow) %v242_v3, 64 }
  0x19   : > { %2440 = vmatpush3.bf16.msra.mxu0 %v2437_v7 }
  0x1a   : > { %2612 = vmatpush3.bf16.msra.mxu1 %v2437_v7 }
  0x1c   : > { %247 = vxpose.xlu0.b32.cont [3/4] (short) (narrow) %v243_v8, 64 }
  0x20   : > { %248 = vxpose.xlu0.b32.end [4/4] (short) (narrow) %v244_v9, 64 }
  0x94   : > { %v261_v10 = vpop.trf.xlu0 }
  0x95   : > { %2231 = vmatprep.mubr.msk.f32.mxu0 %vm288_vm0, %v261_v10 }
  0x98   : > { %v262_v11 = vpop.trf.xlu0 }
  0x99   : > { %2232 = vmatmul.mubr.msk.f32.vlgmr.msra.gmra.mrb[0].mxu0 %vm288_vm0, %v262_v11 }
  0x9c   : > { %v263_v12 = vpop.trf.xlu0 }
  0x9d   : > { %2234 = vmatprep.mubr.msk.f32.mxu0 %vm288_vm0, %v263_v12 }
  0xa0   : > { %v264_v13 = vpop.trf.xlu0 }
  0xa1   : > { %2235 = vmatmul.mubr.msk.f32.gmra.mrb[2].mxu0 %vm288_vm0, %v264_v13 }
  0xa4   : > { %v265_v14 = vpop.trf.xlu0 }
  0xa5   : > { %2237 = vmatprep.mubr.msk.f32.mxu1 %vm288_vm0, %v265_v14 }
  0xa8   : > { %v266_v15 = vpop.trf.xlu0 }
  0xa9   : > { %2238 = vmatmul.mubr.msk.f32.vlgmr.msra.gmra.mrb[0].mxu1 %vm288_vm0, %v266_v15 }
  0xac   : > { %v267_v16 = vpop.trf.xlu0 }
  0xad   : > { %2240 = vmatprep.mubr.msk.f32.mxu1 %vm288_vm0, %v267_v16 }
  0xb0   : > { %v268_v17 = vpop.trf.xlu0 }
  0xb1   : > { %2241 = vmatmul.mubr.msk.f32.gmra.mrb[2].mxu1 %vm288_vm0, %v268_v17 }
 0x16c   : > { %v2233_v19 = vpop.f32.mrb[0].mxu0 }
 0x16d   : > { %v385_v20 = vadd.f32 %v2233_v19, %v2007_v18  ;;  %v379_v21 = vpop.f32.mrb[1].mxu0 }
 0x16e   : > { %v380_v22 = vadd.f32 %v2007_v18, %v379_v21 }
 0x16f   : > { %420 = vst.msk [vmem:[#allocation2 + $0x8] sm:$0xff] %vm418_vm1, %v385_v20 }
 0x170   : > { %419 = vst.msk [vmem:[#allocation2] sm:$0xff] %vm418_vm1, %v380_v22 }
 0x174   : > { %v2236_v23 = vpop.f32.mrb[2].mxu0 }
 0x175   : > { %v395_v24 = vadd.f32 %v2236_v23, %v2007_v18  ;;  %v389_v25 = vpop.f32.mrb[3].mxu0 }
 0x176   : > { %v390_v26 = vadd.f32 %v2007_v18, %v389_v25 }
 0x177   : > { %422 = vst.msk [vmem:[#allocation2 + $0x18] sm:$0xff] %vm418_vm1, %v395_v24 }
 0x178   : > { %421 = vst.msk [vmem:[#allocation2 + $0x10] sm:$0xff] %vm418_vm1, %v390_v26 }
 0x17c   : > { %v2239_v27 = vpop.f32.mrb[0].mxu1 }
 0x17d   : > { %v405_v28 = vadd.f32 %v2239_v27, %v2007_v18  ;;  %v399_v29 = vpop.f32.mrb[1].mxu1 }
 0x17e   : > { %v400_v30 = vadd.f32 %v2007_v18, %v399_v29 }
 0x17f   : > { %424 = vst.msk [vmem:[#allocation2 + $0x28] sm:$0xff] %vm418_vm1, %v405_v28 }
 0x180   : > { %423 = vst.msk [vmem:[#allocation2 + $0x20] sm:$0xff] %vm418_vm1, %v400_v30 }
 0x184   : > { %v2242_v31 = vpop.f32.mrb[2].mxu1 }
 0x185   : > { %v415_v32 = vadd.f32 %v2242_v31, %v2007_v18  ;;  %v409_v33 = vpop.f32.mrb[3].mxu1 }
 0x186   : > { %v410_v34 = vadd.f32 %v2007_v18, %v409_v33 }
 0x187   : > { %426 = vst.msk [vmem:[#allocation2 + $0x38] sm:$0xff] %vm418_vm1, %v415_v32 }
 0x188   : > { %425 = vst.msk [vmem:[#allocation2 + $0x30] sm:$0xff] %vm418_vm1, %v410_v34 }
 0x189 PF: > { %v428_v35 = vld [vmem:[#allocation2] sm:$0xff]  ;;  %v429_v36 = vld [vmem:[#allocation2 + $0x8] sm:$0xff]  ;;  %v430_v37 = vld [vmem:[#allocation2 + $0x10] sm:$0xff]  ;;  %s2945_s17 = smov 96   ;;  %s3074_s19 = sshll.u32 %s2927_s18, 5  ;;  %vm481_vm2 = vcmask 64512   ;;  %v441_v8 = vlaneseq }
 0x18a   : > { %v3061_v38 = vpack.i.bf16 %v429_v36, %v428_v35  ;;  %v431_v39 = vld [vmem:[#allocation2 + $0x18] sm:$0xff]  ;;  %v432_v40 = vld [vmem:[#allocation2 + $0x20] sm:$0xff]  ;;  %v433_v41 = vld [vmem:[#allocation2 + $0x28] sm:$0xff]  ;;  %s3077_s25 = scalar_lea.vmem [#allocation2], %s3074_s19  ;;  %s2946_s26 = smov 64   ;;  %v446_v11 = vstv %s3074_s19  ;;  %vm607_vm5 = vcmask 523264  }
 0x18b   : > { %v3063_v42 = vpack.i.bf16 %v433_v41, %v432_v40  ;;  %v3066_v45 = vpack.i.bf16 %v431_v39, %v430_v37  ;;  %vm3088_vm3 = vmpackc.low %vm481_vm2, %vm481_vm2  ;;  %v442_v9 = vshrl.u32 %v441_v8, 7  ;;  %v3126_v13 = vand.u32 127, %v441_v8  ;;  %s2947_s27 = smov 88   ;;  %s2948_s28 = smov 120  }
 0x18c   : > { %2674 = vrot.lane.b32.xlu0 %v3061_v38, %s2945_s17  ;;  %s2949_s29 = smov 56   ;;  %s2950_s30 = smov 80   ;;  %vm1755_vm9 = vcmask 130048   ;;  %vm1760_vm10 = vcmask 195584   ;;  %vm1776_vm11 = vcmask 261120  }
 0x18d   : > { %2684 = vrot.lane.b32.xlu1 %v3063_v42, %s2945_s17  ;;  %v443_v10 = vadd.s32 8, %v442_v9  ;;  %v3128_v14 = vadd.s32 %v446_v11, %v442_v9  ;;  %v445_v27 = vadd.s32 24, %v442_v9  ;;  %v444_v30 = vadd.s32 16, %v442_v9  ;;  %s2951_s7 = smov 112   ;;  %s2952_s8 = smov 48  }
 0x18e   : > { %v435_v44 = vld [vmem:[#allocation2 + $0x38] sm:$0xff]  ;;  %s2953_s9 = smov 72   ;;  %s2954_s10 = smov 104  }
 0x18f   : > { %v434_v43 = vld [vmem:[#allocation2 + $0x30] sm:$0xff]  ;;  %v3080_v47 = vld [vmem:[%s3077_s25] sm:$0xff]  ;;  %v3109_v1 = vld [vmem:[%s3077_s25 + $0x8] sm:$0xff]  ;;  %v3124_v12 = vadd.s32 %v446_v11, %v443_v10  ;;  %vm453_vm6 = vcmp.gt.s32.totalorder %v3126_v13, %v3128_v14  ;;  %v3150_v29 = vadd.s32 %v446_v11, %v445_v27  ;;  %v3154_v33 = vadd.s32 %v446_v11, %v444_v30  ;;  %s2955_s11 = smov 40   ;;  %s2956_s12 = smov 8  }
 0x190   : > { %v3069_v46 = vpack.i.bf16 %v435_v44, %v434_v43  ;;  %2679 = vrot.lane.b32.xlu0 %v3066_v45, %s2945_s17  ;;  %2259 = vmatprep.mubr.msk.f32.mxu0 %vm481_vm2, %v3080_v47  ;;  %v3112_v2 = vld [vmem:[%s3077_s25 + $0x10] sm:$0xff]  ;;  %v3119_v3 = vld [vmem:[%s3077_s25 + $0x18] sm:$0xff]  ;;  %s2957_s13 = smov 16   ;;  %p2102_p7 = scmp.ne.s32.totalorder %s2927_s18, 1 }
 0x191   : > { %vm454_vm4 = vcmp.gt.s32.totalorder %v3126_v13, %v3124_v12  ;;  %vm456_vm7 = vcmp.gt.s32.totalorder %v3126_v13, %v3150_v29  ;;  %vm455_vm8 = vcmp.gt.s32.totalorder %v3126_v13, %v3154_v33 }
 0x192   : > { %2689 = vrot.lane.b32.xlu1 %v3069_v46, %s2945_s17 }
 0x196   : > { %2694 = vrot.lane.b32.xlu1 %v3061_v38, %s2946_s26 }
 0x1fe   : > { %v2675_v48 = vpop.permute.xlu0 %2674 }
 0x1ff   : > { %v2677_v49 = vunpack.i.h.bf16 %v2675_v48  ;;  %v2676_v50 = vunpack.i.l.bf16 %v2675_v48  ;;  %v2685_v54 = vpop.permute.xlu1 %2684 }
 0x200   : > { %v2687_v58 = vunpack.i.h.bf16 %v2685_v54  ;;  %v2686_v59 = vunpack.i.l.bf16 %v2685_v54 }
 0x201   : > { %v2441_v52 = vpack.c.bf16 %v2677_v49, %v2676_v50 }
 0x202   : > { %v2680_v53 = vpop.permute.xlu0 %2679  ;;  %v2453_v60 = vpack.c.bf16 %v2687_v58, %v2686_v59 }
 0x203   : > { %2443 = vmatprep.subr.msk.bf16.mxu0 %vm3088_vm3, %v2441_v52  ;;  %v2682_v55 = vunpack.i.h.bf16 %v2680_v53  ;;  %v2681_v56 = vunpack.i.l.bf16 %v2680_v53 }
 0x204   : > { %2446 = vmatpush3.bf16.xpose.msk.msra.mxu0 %vm3088_vm3, %v2441_v52  ;;  %v2690_v61 = vpop.permute.xlu1 %2689 }
 0x205   : > { %v2447_v57 = vpack.c.bf16 %v2682_v55, %v2681_v56  ;;  %v2692_v62 = vunpack.i.h.bf16 %v2690_v61  ;;  %v2691_v63 = vunpack.i.l.bf16 %v2690_v61 }
 0x207   : > { %2449 = vmatprep.subr.msk.bf16.mxu0 %vm3088_vm3, %v2447_v57  ;;  %v2459_v0 = vpack.c.bf16 %v2692_v62, %v2691_v63 }
 0x208   : > { %v2695_v4 = vpop.permute.xlu1 %2694 }
 0x209   : > { %v2697_v5 = vunpack.i.h.bf16 %v2695_v4  ;;  %v2696_v6 = vunpack.i.l.bf16 %v2695_v4 }
 0x20b   : > { %v2465_v7 = vpack.c.bf16 %v2697_v5, %v2696_v6 }
 0x20c   : > { %2452 = vmatpush3.bf16.xpose.msk.msra.mxu0 %vm3088_vm3, %v2447_v57 }
 0x20d   : > { %2455 = vmatprep.subr.msk.bf16.mxu0 %vm3088_vm3, %v2453_v60  ;;  %2466 = vmatprep.subr.bf16.mxu1 %v2465_v7 }
 0x20e   : > { %2468 = vmatpush3.bf16.msra.mxu1 %v2465_v7 }
 0x214   : > { %2458 = vmatpush3.bf16.xpose.msk.msra.mxu0 %vm3088_vm3, %v2453_v60 }
 0x215   : > { %2461 = vmatprep.subr.msk.bf16.mxu0 %vm3088_vm3, %v2459_v0 }
 0x21c   : > { %2464 = vmatpush3.bf16.xpose.msk.msra.mxu0 %vm3088_vm3, %v2459_v0 }
 0x223   : > { %2260 = vmatmul.mubr.msk.f32.vlgmr.msra.gmra.mrb[0].mxu0 %vm481_vm2, %v3109_v1 }
 0x224   : > { %2262 = vmatprep.mubr.msk.f32.mxu0 %vm481_vm2, %v3112_v2 }
 0x227   : > { %2263 = vmatmul.mubr.msk.f32.gmra.mrb[2].mxu0 %vm481_vm2, %v3119_v3 }
 0x2f6   : > { %v2261_v15 = vpop.f32.mrb[0].mxu0 }
 0x2f7   : > { %v596_v16 = vmul.f32 0.35355338, %v2261_v15  ;;  %v576_v17 = vpop.f32.mrb[1].mxu0 }
 0x2f8   : > { %v595_v18 = vmul.f32 0.35355338, %v576_v17 }
 0x2f9   : > { %v2030_v19 = vadd.f32 -10000.0, %v596_v16 }
 0x2fa   : > { %v2029_v20 = vadd.f32 -10000.0, %v595_v18  ;;  %v2264_v21 = vpop.f32.mrb[2].mxu0 }
 0x2fb   : > { %v604_v22 = vsel %vm454_vm4, %v2030_v19, %v596_v16  ;;  %v586_v23 = vpop.f32.mrb[3].mxu0  ;;  %v598_v28 = vmul.f32 0.35355338, %v2264_v21 }
 0x2fc   : > { %v611_v24 = vsel %vm607_vm5, %v604_v22, -inf  ;;  %v603_v25 = vsel %vm453_vm6, %v2029_v20, %v595_v18  ;;  %v597_v32 = vmul.f32 0.35355338, %v586_v23 }
 0x2fd   : > { %612 = vmax.xlane.f32.xlu1 %v611_v24  ;;  %v608_v26 = vsel %vm607_vm5, %v603_v25, -inf  ;;  %v2032_v31 = vadd.f32 -10000.0, %v598_v28 }
 0x2fe   : > { %609 = vmax.xlane.f32.xlu0 %v608_v26  ;;  %v2031_v34 = vadd.f32 -10000.0, %v597_v32 }
 0x2ff   : > { %v606_v35 = vsel %vm456_vm7, %v2032_v31, %v598_v28 }
 0x300   : > { %v617_v36 = vsel %vm607_vm5, %v606_v35, -inf  ;;  %v605_v37 = vsel %vm455_vm8, %v2031_v34, %v597_v32 }
 0x301   : > { %v614_v39 = vsel %vm607_vm5, %v605_v37, -inf }
 0x30e   : > { %2704 = vrot.lane.b32.xlu1 %v3063_v42, %s2946_s26 }
 0x312   : > { %2709 = vrot.lane.b32.xlu1 %v3069_v46, %s2946_s26 }
 0x314   : > { %2699 = vrot.lane.b32.xlu0 %v3066_v45, %s2946_s26 }
 0x316   : > { %2724 = vrot.lane.b32.xlu1 %v3063_v42, %s2947_s27 }
 0x333   : > { %618 = vmax.xlane.f32.xlu0 %v617_v36 }
 0x337   : > { %615 = vmax.xlane.f32.xlu0 %v614_v39 }
 0x34d   : > { %2714 = vrot.lane.b32.xlu0 %v3061_v38, %s2947_s27 }
 0x38a   : > { %v613_v40 = vpop.xlane.xlu1 %612 }
 0x38b   : > { %v621_v41 = vsub.f32 %v604_v22, %v613_v40  ;;  %v610_v43 = vpop.xlane.xlu0 %609 }
 0x38c   : > { %v620_v44 = vsub.f32 %v603_v25, %v610_v43 }
 0x38d   : > { %v626_v48 = vmul.f32 1.442695, %v621_v41 }
 0x38e   : > { %v624_v49 = vmul.f32 1.442695, %v620_v44  ;;  %v2705_v50 = vpop.permute.xlu1 %2704 }
 0x38f   : > { %2833 = vpow2.f32 %v626_v48  ;;  %v2700_v52 = vpop.permute.xlu0 %2699  ;;  %v2707_v53 = vunpack.i.h.bf16 %v2705_v50  ;;  %v2706_v54 = vunpack.i.l.bf16 %v2705_v50 }
 0x390   : > { %2835 = vpow2.f32 %v624_v49  ;;  %v2702_v55 = vunpack.i.h.bf16 %v2700_v52  ;;  %v2701_v56 = vunpack.i.l.bf16 %v2700_v52 }
 0x391   : > { %v2473_v58 = vpack.c.bf16 %v2707_v53, %v2706_v54 }
 0x392   : > { %v2469_v57 = vpack.c.bf16 %v2702_v55, %v2701_v56  ;;  %v2710_v59 = vpop.permute.xlu1 %2709 }
 0x393   : > { %v2712_v60 = vunpack.i.h.bf16 %v2710_v59  ;;  %v2711_v61 = vunpack.i.l.bf16 %v2710_v59 }
 0x394   : > { %2470 = vmatprep.subr.bf16.mxu1 %v2469_v57 }
 0x395   : > { %2472 = vmatpush3.bf16.msra.mxu1 %v2469_v57  ;;  %v2477_v62 = vpack.c.bf16 %v2712_v60, %v2711_v61 }
 0x396   : > { %2474 = vmatprep.subr.bf16.mxu1 %v2473_v58  ;;  %v2725_v23 = vpop.permute.xlu1 %2724 }
 0x397   : > { %v2727_v36 = vunpack.i.h.bf16 %v2725_v23 }
 0x399   : > { %v2834_v63 = vpop.eup %2833  ;;  %2476 = vmatpush3.bf16.msra.mxu1 %v2473_v58 }
 0x39a   : > { %v2836_v0 = vpop.eup %2835  ;;  %v635_v4 = vsel %vm607_vm5, %v2834_v63, 0.0  ;;  %2478 = vmatprep.subr.bf16.mxu1 %v2477_v62 }
 0x39b   : > { %636 = vadd.xlane.f32.xlu0 %v635_v4  ;;  %v632_v5 = vsel %vm607_vm5, %v2836_v0, 0.0 }
 0x39c   : > { %633 = vadd.xlane.f32.xlu1 %v632_v5 }
 0x39d   : > { %2480 = vmatpush3.bf16.msra.mxu1 %v2477_v62 }
 0x3ad   : > { %2729 = vrot.lane.b32.xlu1 %v3069_v46, %s2947_s27 }
 0x3b1   : > { %2719 = vrot.lane.b32.xlu0 %v3066_v45, %s2947_s27 }
 0x3c0   : > { %v619_v6 = vpop.xlane.xlu0 %618 }
 0x3c1   : > { %v623_v7 = vsub.f32 %v606_v35, %v619_v6 }
 0x3c3   : > { %v630_v8 = vmul.f32 1.442695, %v623_v7 }
 0x3c4   : > { %v616_v9 = vpop.xlane.xlu0 %615 }
 0x3c5   : > { %2837 = vpow2.f32 %v630_v8  ;;  %v622_v10 = vsub.f32 %v605_v37, %v616_v9  ;;  %v2726_v37 = vunpack.i.l.bf16 %v2725_v23 }
 0x3c7   : > { %v628_v11 = vmul.f32 1.442695, %v622_v10  ;;  %v2493_v39 = vpack.c.bf16 %v2727_v36, %v2726_v37 }
 0x3c8   : > { %v2715_v15 = vpop.permute.xlu0 %2714 }
 0x3c9   : > { %2839 = vpow2.f32 %v628_v11  ;;  %v2717_v16 = vunpack.i.h.bf16 %v2715_v15  ;;  %v2716_v17 = vunpack.i.l.bf16 %v2715_v15 }
 0x3cb   : > { %v2481_v18 = vpack.c.bf16 %v2717_v16, %v2716_v17 }
 0x3cd   : > { %2483 = vmatprep.subr.msk.bf16.mxu1 %vm3088_vm3, %v2481_v18 }
 0x3cf   : > { %v2838_v19 = vpop.eup %2837 }
 0x3d0   : > { %v641_v20 = vsel %vm607_vm5, %v2838_v19, 0.0 }
 0x3d1   : > { %642 = vadd.xlane.f32.xlu0 %v641_v20 }
 0x3d3   : > { %v2840_v21 = vpop.eup %2839 }
 0x3d4   : > { %v638_v22 = vsel %vm607_vm5, %v2840_v21, 0.0 }
 0x3d5   : > { %639 = vadd.xlane.f32.xlu1 %v638_v22 }
 0x3e6   : > { %775 = vrot.lane.b32.xlu1 %v3109_v1, %s2948_s28 }
 0x3e7   : > { %773 = vrot.lane.b32.xlu0 %v3080_v47, %s2948_s28 }
 0x3ea   : > { %779 = vrot.lane.b32.xlu1 %v3119_v3, %s2948_s28 }
 0x3eb   : > { %777 = vrot.lane.b32.xlu0 %v3112_v2, %s2948_s28 }
 0x3ee   : > { %2734 = vrot.lane.b32.xlu1 %v3061_v38, %s2949_s29 }
 0x428   : > { %v637_v24 = vpop.xlane.xlu0 %636 }
 0x429   : > { %2841 = vrcp.f32 %v637_v24  ;;  %v634_v25 = vpop.xlane.xlu1 %633 }
 0x42a   : > { %2843 = vrcp.f32 %v634_v25 }
 0x42c   : > { %v2720_v26 = vpop.permute.xlu0 %2719 }
 0x42d   : > { %v2722_v30 = vunpack.i.h.bf16 %v2720_v26  ;;  %v2721_v31 = vunpack.i.l.bf16 %v2720_v26  ;;  %v2730_v40 = vpop.permute.xlu1 %2729 }
 0x42e   : > { %v2732_v41 = vunpack.i.h.bf16 %v2730_v40  ;;  %v2731_v43 = vunpack.i.l.bf16 %v2730_v40 }
 0x42f   : > { %v2487_v35 = vpack.c.bf16 %v2722_v30, %v2721_v31 }
 0x430   : > { %v2499_v44 = vpack.c.bf16 %v2732_v41, %v2731_v43 }
 0x433   : > { %v2842_v27 = vpop.eup %2841 }
 0x434   : > { %v2844_v28 = vpop.eup %2843  ;;  %v647_v34 = vmul.f32 %v2842_v27, %v2834_v63 }
 0x435   : > { %v645_v32 = vmul.f32 %v2844_v28, %v2836_v0 }
 0x437   : > { %2281 = vmatprep.mubr.msk.f32.mxu1 %vm607_vm5, %v645_v32 }
 0x438   : > { %2282 = vmatmul.mubr.msk.f32.vlgmr.msra.gmra.mrb[0].mxu1 %vm607_vm5, %v647_v34 }
 0x439   : > { %2486 = vmatpush3.bf16.xpose.msk.msra.mxu1 %vm3088_vm3, %v2481_v18 }
 0x43a   : > { %2489 = vmatprep.subr.msk.bf16.mxu1 %vm3088_vm3, %v2487_v35 }
 0x441   : > { %2492 = vmatpush3.bf16.xpose.msk.msra.mxu1 %vm3088_vm3, %v2487_v35 }
 0x442   : > { %2495 = vmatprep.subr.msk.bf16.mxu1 %vm3088_vm3, %v2493_v39 }
 0x449   : > { %2498 = vmatpush3.bf16.xpose.msk.msra.mxu1 %vm3088_vm3, %v2493_v39 }
 0x44a   : > { %2501 = vmatprep.subr.msk.bf16.mxu1 %vm3088_vm3, %v2499_v44 }
 0x451   : > { %2504 = vmatpush3.bf16.xpose.msk.msra.mxu1 %vm3088_vm3, %v2499_v44 }
 0x45e   : > { %v643_v48 = vpop.xlane.xlu0 %642 }
 0x45f   : > { %2845 = vrcp.f32 %v643_v48 }
 0x462   : > { %v640_v49 = vpop.xlane.xlu1 %639  ;;  %v774_v55 = vpop.permute.xlu0 %773 }
 0x463   : > { %2847 = vrcp.f32 %v640_v49 }
 0x466   : > { %v776_v56 = vpop.permute.xlu1 %775  ;;  %v778_v57 = vpop.permute.xlu0 %777 }
 0x469   : > { %v2846_v50 = vpop.eup %2845 }
 0x46a   : > { %v651_v54 = vmul.f32 %v2846_v50, %v2838_v19  ;;  %v780_v58 = vpop.permute.xlu1 %779 }
 0x46d   : > { %v2848_v52 = vpop.eup %2847 }
 0x46e   : > { %v649_v53 = vmul.f32 %v2848_v52, %v2840_v21  ;;  %v2735_v59 = vpop.permute.xlu1 %2734 }
 0x46f   : > { %v2737_v60 = vunpack.i.h.bf16 %v2735_v59  ;;  %v2736_v61 = vunpack.i.l.bf16 %v2735_v59 }
 0x470   : > { %2284 = vmatprep.mubr.msk.f32.mxu1 %vm607_vm5, %v649_v53 }
 0x471   : > { %2285 = vmatmul.mubr.msk.f32.gmra.mrb[2].mxu1 %vm607_vm5, %v651_v54  ;;  %v2505_v0 = vpack.c.bf16 %v2737_v60, %v2736_v61 }
 0x472   : > { %2303 = vmatprep.mubr.msk.f32.mxu1 %vm481_vm2, %v774_v55 }
 0x473   : > { %2506 = vmatprep.subr.bf16.mxu0 %v2505_v0 }
 0x474   : > { %2508 = vmatpush3.bf16.msra.mxu0 %v2505_v0 }
 0x475   : > { %2304 = vmatmul.mubr.msk.f32.vlgmr.msra.gmra.mrb[4].mxu1 %vm481_vm2, %v776_v56 }
 0x476   : > { %2306 = vmatprep.mubr.msk.f32.mxu1 %vm481_vm2, %v778_v57 }
 0x479   : > { %2307 = vmatmul.mubr.msk.f32.gmra.mrb[6].mxu1 %vm481_vm2, %v780_v58 }
 0x50b   : > { %v3205_v62 = vpop.f32.mrb[0].mxu1 }
 0x50c   : > { %v3207_v63 = vpop.f32.mrb[1].mxu1 }
 0x544   : > { %v3209_v4 = vpop.f32.mrb[2].mxu1 }
 0x545   : > { %v3211_v5 = vpop.f32.mrb[3].mxu1 }
 0x548   : > { %v2305_v6 = vpop.f32.mrb[4].mxu1 }
 0x549   : > { %v907_v7 = vmul.f32 0.35355338, %v2305_v6  ;;  %v887_v8 = vpop.f32.mrb[5].mxu1 }
 0x54a   : > { %v906_v9 = vmul.f32 0.35355338, %v887_v8 }
 0x54b   : > { %v2050_v10 = vadd.f32 -10000.0, %v907_v7 }
 0x54c   : > { %v2049_v11 = vadd.f32 -10000.0, %v906_v9  ;;  %v2308_v15 = vpop.f32.mrb[6].mxu1 }
 0x54d   : > { %v915_v16 = vsel %vm454_vm4, %v2050_v10, %v907_v7  ;;  %v897_v17 = vpop.f32.mrb[7].mxu1  ;;  %v909_v21 = vmul.f32 0.35355338, %v2308_v15 }
 0x54e   : > { %v921_v18 = vsel %vm607_vm5, %v915_v16, -inf  ;;  %v914_v19 = vsel %vm453_vm6, %v2049_v11, %v906_v9  ;;  %v908_v23 = vmul.f32 0.35355338, %v897_v17 }
 0x54f   : > { %922 = vmax.xlane.f32.xlu1 %v921_v18  ;;  %v918_v20 = vsel %vm607_vm5, %v914_v19, -inf  ;;  %v2052_v22 = vadd.f32 -10000.0, %v909_v21 }
 0x550   : > { %919 = vmax.xlane.f32.xlu0 %v918_v20  ;;  %v2051_v24 = vadd.f32 -10000.0, %v908_v23 }
 0x551   : > { %v917_v25 = vsel %vm456_vm7, %v2052_v22, %v909_v21 }
 0x552   : > { %v927_v26 = vsel %vm607_vm5, %v917_v25, -inf  ;;  %v916_v27 = vsel %vm455_vm8, %v2051_v24, %v908_v23 }
 0x553   : > { %v924_v28 = vsel %vm607_vm5, %v916_v27, -inf }
 0x560   : > { %2744 = vrot.lane.b32.xlu1 %v3063_v42, %s2949_s29 }
 0x564   : > { %2749 = vrot.lane.b32.xlu1 %v3069_v46, %s2949_s29 }
 0x566   : > { %2739 = vrot.lane.b32.xlu0 %v3066_v45, %s2949_s29  ;;  %s2958_s29 = smov 24  }
 0x568   : > { %2764 = vrot.lane.b32.xlu1 %v3063_v42, %s2950_s30 }
 0x585   : > { %928 = vmax.xlane.f32.xlu0 %v927_v26 }
 0x589   : > { %925 = vmax.xlane.f32.xlu0 %v924_v28 }
 0x59f   : > { %2754 = vrot.lane.b32.xlu0 %v3061_v38, %s2950_s30 }
 0x5dc   : > { %v923_v30 = vpop.xlane.xlu1 %922 }
 0x5dd   : > { %v931_v31 = vsub.f32 %v915_v16, %v923_v30  ;;  %v920_v32 = vpop.xlane.xlu0 %919 }
 0x5de   : > { %v930_v34 = vsub.f32 %v914_v19, %v920_v32 }
 0x5df   : > { %v936_v35 = vmul.f32 1.442695, %v931_v31 }
 0x5e0   : > { %v934_v36 = vmul.f32 1.442695, %v930_v34  ;;  %v2745_v37 = vpop.permute.xlu1 %2744 }
 0x5e1   : > { %2849 = vpow2.f32 %v936_v35  ;;  %v2740_v39 = vpop.permute.xlu0 %2739  ;;  %v2747_v40 = vunpack.i.h.bf16 %v2745_v37  ;;  %v2746_v41 = vunpack.i.l.bf16 %v2745_v37 }
 0x5e2   : > { %2851 = vpow2.f32 %v934_v36  ;;  %v2742_v43 = vunpack.i.h.bf16 %v2740_v39  ;;  %v2741_v44 = vunpack.i.l.bf16 %v2740_v39 }
 0x5e3   : > { %v2513_v49 = vpack.c.bf16 %v2747_v40, %v2746_v41 }
 0x5e4   : > { %v2509_v48 = vpack.c.bf16 %v2742_v43, %v2741_v44  ;;  %v2750_v50 = vpop.permute.xlu1 %2749 }
 0x5e5   : > { %v2752_v52 = vunpack.i.h.bf16 %v2750_v50  ;;  %v2751_v53 = vunpack.i.l.bf16 %v2750_v50 }
 0x5e6   : > { %2510 = vmatprep.subr.bf16.mxu0 %v2509_v48 }
 0x5e7   : > { %2512 = vmatpush3.bf16.msra.mxu0 %v2509_v48  ;;  %v2517_v54 = vpack.c.bf16 %v2752_v52, %v2751_v53 }
 0x5e8   : > { %2514 = vmatprep.subr.bf16.mxu0 %v2513_v49  ;;  %v2765_v19 = vpop.permute.xlu1 %2764 }
 0x5e9   : > { %v2767_v31 = vunpack.i.h.bf16 %v2765_v19  ;;  %v2766_v32 = vunpack.i.l.bf16 %v2765_v19 }
 0x5eb   : > { %v2850_v55 = vpop.eup %2849  ;;  %2516 = vmatpush3.bf16.msra.mxu0 %v2513_v49  ;;  %v2533_v34 = vpack.c.bf16 %v2767_v31, %v2766_v32 }
 0x5ec   : > { %v2852_v56 = vpop.eup %2851  ;;  %v945_v57 = vsel %vm607_vm5, %v2850_v55, 0.0  ;;  %2518 = vmatprep.subr.bf16.mxu0 %v2517_v54 }
 0x5ed   : > { %946 = vadd.xlane.f32.xlu0 %v945_v57  ;;  %v942_v58 = vsel %vm607_vm5, %v2852_v56, 0.0 }
 0x5ee   : > { %943 = vadd.xlane.f32.xlu1 %v942_v58 }
 0x5ef   : > { %2520 = vmatpush3.bf16.msra.mxu0 %v2517_v54 }
 0x5ff   : > { %2769 = vrot.lane.b32.xlu1 %v3069_v46, %s2950_s30 }
 0x603   : > { %2759 = vrot.lane.b32.xlu0 %v3066_v45, %s2950_s30 }
 0x612   : > { %v929_v59 = vpop.xlane.xlu0 %928 }
 0x613   : > { %v933_v60 = vsub.f32 %v917_v25, %v929_v59 }
 0x615   : > { %v940_v61 = vmul.f32 1.442695, %v933_v60 }
 0x616   : > { %v926_v0 = vpop.xlane.xlu0 %925 }
 0x617   : > { %2853 = vpow2.f32 %v940_v61  ;;  %v932_v6 = vsub.f32 %v916_v27, %v926_v0 }
 0x619   : > { %v938_v7 = vmul.f32 1.442695, %v932_v6 }
 0x61a   : > { %v2755_v8 = vpop.permute.xlu0 %2754 }
 0x61b   : > { %2855 = vpow2.f32 %v938_v7  ;;  %v2757_v9 = vunpack.i.h.bf16 %v2755_v8  ;;  %v2756_v10 = vunpack.i.l.bf16 %v2755_v8 }
 0x61d   : > { %v2521_v11 = vpack.c.bf16 %v2757_v9, %v2756_v10 }
 0x61f   : > { %2523 = vmatprep.subr.msk.bf16.mxu0 %vm3088_vm3, %v2521_v11 }
 0x621   : > { %v2854_v15 = vpop.eup %2853 }
 0x622   : > { %v951_v16 = vsel %vm607_vm5, %v2854_v15, 0.0 }
 0x623   : > { %952 = vadd.xlane.f32.xlu0 %v951_v16 }
 0x625   : > { %v2856_v17 = vpop.eup %2855 }
 0x626   : > { %v948_v18 = vsel %vm607_vm5, %v2856_v17, 0.0 }
 0x627   : > { %949 = vadd.xlane.f32.xlu1 %v948_v18 }
 0x638   : > { %1085 = vrot.lane.b32.xlu1 %v3109_v1, %s2951_s7 }
 0x639   : > { %1083 = vrot.lane.b32.xlu0 %v3080_v47, %s2951_s7 }
 0x63c   : > { %1089 = vrot.lane.b32.xlu1 %v3119_v3, %s2951_s7 }
 0x63d   : > { %1087 = vrot.lane.b32.xlu0 %v3112_v2, %s2951_s7 }
 0x640   : > { %2774 = vrot.lane.b32.xlu1 %v3061_v38, %s2952_s8 }
 0x67a   : > { %v947_v20 = vpop.xlane.xlu0 %946 }
 0x67b   : > { %2857 = vrcp.f32 %v947_v20  ;;  %v944_v21 = vpop.xlane.xlu1 %943 }
 0x67c   : > { %2859 = vrcp.f32 %v944_v21 }
 0x67e   : > { %v2760_v22 = vpop.permute.xlu0 %2759 }
 0x67f   : > { %v2762_v25 = vunpack.i.h.bf16 %v2760_v22  ;;  %v2761_v26 = vunpack.i.l.bf16 %v2760_v22  ;;  %v2770_v35 = vpop.permute.xlu1 %2769 }
 0x680   : > { %v2772_v36 = vunpack.i.h.bf16 %v2770_v35  ;;  %v2771_v37 = vunpack.i.l.bf16 %v2770_v35 }
 0x681   : > { %v2527_v30 = vpack.c.bf16 %v2762_v25, %v2761_v26 }
 0x682   : > { %v2539_v39 = vpack.c.bf16 %v2772_v36, %v2771_v37 }
 0x685   : > { %v2858_v23 = vpop.eup %2857 }
 0x686   : > { %v2860_v24 = vpop.eup %2859  ;;  %v957_v28 = vmul.f32 %v2858_v23, %v2850_v55 }
 0x687   : > { %v955_v27 = vmul.f32 %v2860_v24, %v2852_v56 }
 0x689   : > { %2325 = vmatprep.mubr.msk.f32.mxu0 %vm607_vm5, %v955_v27 }
 0x68a   : > { %2326 = vmatmul.mubr.msk.f32.vlgmr.msra.gmra.mrb[4].mxu0 %vm607_vm5, %v957_v28 }
 0x68b   : > { %2526 = vmatpush3.bf16.xpose.msk.msra.mxu0 %vm3088_vm3, %v2521_v11 }
 0x68c   : > { %2529 = vmatprep.subr.msk.bf16.mxu0 %vm3088_vm3, %v2527_v30 }
 0x693   : > { %2532 = vmatpush3.bf16.xpose.msk.msra.mxu0 %vm3088_vm3, %v2527_v30 }
 0x694   : > { %2535 = vmatprep.subr.msk.bf16.mxu0 %vm3088_vm3, %v2533_v34 }
 0x69b   : > { %2538 = vmatpush3.bf16.xpose.msk.msra.mxu0 %vm3088_vm3, %v2533_v34 }
 0x69c   : > { %2541 = vmatprep.subr.msk.bf16.mxu0 %vm3088_vm3, %v2539_v39 }
 0x6a3   : > { %2544 = vmatpush3.bf16.xpose.msk.msra.mxu0 %vm3088_vm3, %v2539_v39 }
 0x6b0   : > { %v953_v40 = vpop.xlane.xlu0 %952 }
 0x6b1   : > { %2861 = vrcp.f32 %v953_v40 }
 0x6b4   : > { %v950_v41 = vpop.xlane.xlu1 %949  ;;  %v1084_v50 = vpop.permute.xlu0 %1083 }
 0x6b5   : > { %2863 = vrcp.f32 %v950_v41 }
 0x6b8   : > { %v1086_v52 = vpop.permute.xlu1 %1085  ;;  %v1088_v53 = vpop.permute.xlu0 %1087 }
 0x6bb   : > { %v2862_v43 = vpop.eup %2861 }
 0x6bc   : > { %v961_v49 = vmul.f32 %v2862_v43, %v2854_v15  ;;  %v1090_v54 = vpop.permute.xlu1 %1089 }
 0x6bf   : > { %v2864_v44 = vpop.eup %2863 }
 0x6c0   : > { %v959_v48 = vmul.f32 %v2864_v44, %v2856_v17  ;;  %v2775_v55 = vpop.permute.xlu1 %2774 }
 0x6c1   : > { %v2777_v56 = vunpack.i.h.bf16 %v2775_v55  ;;  %v2776_v57 = vunpack.i.l.bf16 %v2775_v55 }
 0x6c2   : > { %2328 = vmatprep.mubr.msk.f32.mxu0 %vm607_vm5, %v959_v48 }
 0x6c3   : > { %2329 = vmatmul.mubr.msk.f32.gmra.mrb[6].mxu0 %vm607_vm5, %v961_v49  ;;  %v2545_v60 = vpack.c.bf16 %v2777_v56, %v2776_v57 }
 0x6c4   : > { %2347 = vmatprep.mubr.msk.f32.mxu0 %vm481_vm2, %v1084_v50 }
 0x6c5   : > { %2546 = vmatprep.subr.bf16.mxu1 %v2545_v60 }
 0x6c6   : > { %2548 = vmatpush3.bf16.msra.mxu1 %v2545_v60 }
 0x6c7   : > { %2348 = vmatmul.mubr.msk.f32.vlgmr.msra.gmra.mrb[8].mxu0 %vm481_vm2, %v1086_v52 }
 0x6c8   : > { %2350 = vmatprep.mubr.msk.f32.mxu0 %vm481_vm2, %v1088_v53 }
 0x6cb   : > { %2351 = vmatmul.mubr.msk.f32.gmra.mrb[10].mxu0 %vm481_vm2, %v1090_v54 }
 0x75d   : > { %v3273_v58 = vpop.f32.mrb[4].mxu0 }
 0x75e   : > { %v3275_v59 = vpop.f32.mrb[5].mxu0 }
 0x796   : > { %v3277_v61 = vpop.f32.mrb[6].mxu0 }
 0x797   : > { %v3279_v0 = vpop.f32.mrb[7].mxu0 }
 0x79a   : > { %v2349_v6 = vpop.f32.mrb[8].mxu0 }
 0x79b   : > { %v1217_v7 = vmul.f32 0.35355338, %v2349_v6  ;;  %v1197_v8 = vpop.f32.mrb[9].mxu0 }
 0x79c   : > { %v1216_v9 = vmul.f32 0.35355338, %v1197_v8 }
 0x79d   : > { %v2070_v10 = vadd.f32 -10000.0, %v1217_v7 }
 0x79e   : > { %v2069_v11 = vadd.f32 -10000.0, %v1216_v9  ;;  %v2352_v15 = vpop.f32.mrb[10].mxu0 }
 0x79f   : > { %v1225_v16 = vsel %vm454_vm4, %v2070_v10, %v1217_v7  ;;  %v1207_v17 = vpop.f32.mrb[11].mxu0  ;;  %v1219_v21 = vmul.f32 0.35355338, %v2352_v15 }
 0x7a0   : > { %v1231_v18 = vsel %vm607_vm5, %v1225_v16, -inf  ;;  %v1224_v19 = vsel %vm453_vm6, %v2069_v11, %v1216_v9  ;;  %v1218_v23 = vmul.f32 0.35355338, %v1207_v17 }
 0x7a1   : > { %1232 = vmax.xlane.f32.xlu1 %v1231_v18  ;;  %v1228_v20 = vsel %vm607_vm5, %v1224_v19, -inf  ;;  %v2072_v22 = vadd.f32 -10000.0, %v1219_v21 }
 0x7a2   : > { %1229 = vmax.xlane.f32.xlu0 %v1228_v20  ;;  %v2071_v24 = vadd.f32 -10000.0, %v1218_v23 }
 0x7a3   : > { %v1227_v25 = vsel %vm456_vm7, %v2072_v22, %v1219_v21 }
 0x7a4   : > { %v1237_v26 = vsel %vm607_vm5, %v1227_v25, -inf  ;;  %v1226_v27 = vsel %vm455_vm8, %v2071_v24, %v1218_v23 }
 0x7b2   : > { %2784 = vrot.lane.b32.xlu1 %v3063_v42, %s2952_s8 }
 0x7b6   : > { %2789 = vrot.lane.b32.xlu1 %v3069_v46, %s2952_s8 }
 0x7b8   : > { %2779 = vrot.lane.b32.xlu0 %v3066_v45, %s2952_s8  ;;  %s1874_s8 = scalar_lea.vmem [#allocation3], %s3074_s19 }
 0x7ba   : > { %2804 = vrot.lane.b32.xlu1 %v3063_v42, %s2953_s9  ;;  %v1234_v42 = vsel %vm607_vm5, %v1226_v27, -inf }
 0x7be   : > { %2809 = vrot.lane.b32.xlu1 %v3069_v46, %s2953_s9 }
 0x7d7   : > { %1238 = vmax.xlane.f32.xlu0 %v1237_v26 }
 0x7db   : > { %1235 = vmax.xlane.f32.xlu0 %v1234_v42 }
 0x7f1   : > { %2794 = vrot.lane.b32.xlu0 %v3061_v38, %s2953_s9 }
 0x82e   : > { %v1233_v46 = vpop.xlane.xlu1 %1232 }
 0x82f   : > { %v1241_v28 = vsub.f32 %v1225_v16, %v1233_v46  ;;  %v1230_v30 = vpop.xlane.xlu0 %1229 }
 0x830   : > { %v1240_v31 = vsub.f32 %v1224_v19, %v1230_v30 }
 0x831   : > { %v1246_v32 = vmul.f32 1.442695, %v1241_v28 }
 0x832   : > { %v1244_v34 = vmul.f32 1.442695, %v1240_v31  ;;  %v2785_v35 = vpop.permute.xlu1 %2784 }
 0x833   : > { %2865 = vpow2.f32 %v1246_v32  ;;  %v2780_v36 = vpop.permute.xlu0 %2779  ;;  %v2787_v37 = vunpack.i.h.bf16 %v2785_v35  ;;  %v2786_v39 = vunpack.i.l.bf16 %v2785_v35 }
 0x834   : > { %2867 = vpow2.f32 %v1244_v34  ;;  %v2782_v40 = vunpack.i.h.bf16 %v2780_v36  ;;  %v2781_v41 = vunpack.i.l.bf16 %v2780_v36 }
 0x835   : > { %v2553_v44 = vpack.c.bf16 %v2787_v37, %v2786_v39 }
 0x836   : > { %v2549_v43 = vpack.c.bf16 %v2782_v40, %v2781_v41  ;;  %v2790_v48 = vpop.permute.xlu1 %2789 }
 0x837   : > { %v2792_v49 = vunpack.i.h.bf16 %v2790_v48  ;;  %v2791_v50 = vunpack.i.l.bf16 %v2790_v48 }
 0x838   : > { %2550 = vmatprep.subr.bf16.mxu1 %v2549_v43 }
 0x839   : > { %2552 = vmatpush3.bf16.msra.mxu1 %v2549_v43  ;;  %v2557_v38 = vpack.c.bf16 %v2792_v49, %v2791_v50 }
 0x83a   : > { %2554 = vmatprep.subr.bf16.mxu1 %v2553_v44  ;;  %v2805_v18 = vpop.permute.xlu1 %2804 }
 0x83d   : > { %v2866_v52 = vpop.eup %2865  ;;  %2556 = vmatpush3.bf16.msra.mxu1 %v2553_v44 }
 0x83e   : > { %v2868_v53 = vpop.eup %2867  ;;  %v1255_v54 = vsel %vm607_vm5, %v2866_v52, 0.0  ;;  %2558 = vmatprep.subr.bf16.mxu1 %v2557_v38  ;;  %v2810_v19 = vpop.permute.xlu1 %2809 }
 0x83f   : > { %1256 = vadd.xlane.f32.xlu0 %v1255_v54  ;;  %v1252_v55 = vsel %vm607_vm5, %v2868_v53, 0.0  ;;  %v2812_v28 = vunpack.i.h.bf16 %v2810_v19  ;;  %v2811_v30 = vunpack.i.l.bf16 %v2810_v19 }
 0x840   : > { %1253 = vadd.xlane.f32.xlu1 %v1252_v55 }
 0x841   : > { %2560 = vmatpush3.bf16.msra.mxu1 %v2557_v38  ;;  %v2579_v31 = vpack.c.bf16 %v2812_v28, %v2811_v30 }
 0x851   : > { %1395 = vrot.lane.b32.xlu1 %v3109_v1, %s2954_s10 }
 0x855   : > { %2799 = vrot.lane.b32.xlu0 %v3066_v45, %s2953_s9 }
 0x864   : > { %v1239_v56 = vpop.xlane.xlu0 %1238 }
 0x865   : > { %v1243_v57 = vsub.f32 %v1227_v25, %v1239_v56 }
 0x867   : > { %v1250_v60 = vmul.f32 1.442695, %v1243_v57 }
 0x868   : > { %v1236_v6 = vpop.xlane.xlu0 %1235 }
 0x869   : > { %2869 = vpow2.f32 %v1250_v60  ;;  %v1242_v7 = vsub.f32 %v1226_v27, %v1236_v6 }
 0x86b   : > { %v1248_v8 = vmul.f32 1.442695, %v1242_v7 }
 0x86c   : > { %v2795_v9 = vpop.permute.xlu0 %2794 }
 0x86d   : > { %2871 = vpow2.f32 %v1248_v8  ;;  %v2797_v10 = vunpack.i.h.bf16 %v2795_v9  ;;  %v2796_v11 = vunpack.i.l.bf16 %v2795_v9 }
 0x86f   : > { %v2561_v15 = vpack.c.bf16 %v2797_v10, %v2796_v11 }
 0x871   : > { %2563 = vmatprep.subr.msk.bf16.mxu1 %vm3088_vm3, %v2561_v15 }
 0x873   : > { %v2870_v16 = vpop.eup %2869 }
 0x874   : > { %v1261_v1 = vsel %vm607_vm5, %v2870_v16, 0.0 }
 0x875   : > { %1262 = vadd.xlane.f32.xlu0 %v1261_v1 }
 0x877   : > { %v2872_v45 = vpop.eup %2871 }
 0x878   : > { %v1258_v17 = vsel %vm607_vm5, %v2872_v45, 0.0 }
 0x879   : > { %1259 = vadd.xlane.f32.xlu1 %v1258_v17  ;;  %v2897_v17 = vld [vmem:[#allocation2] sm:$0xff] }
 0x88a   : > { %1399 = vrot.lane.b32.xlu1 %v3119_v3, %s2954_s10 }
 0x88b   : > { %1393 = vrot.lane.b32.xlu0 %v3080_v47, %s2954_s10  ;;  %v2807_v47 = vunpack.i.h.bf16 %v2805_v18 }
 0x88f   : > { %1397 = vrot.lane.b32.xlu0 %v3112_v2, %s2954_s10  ;;  %v2806_v2 = vunpack.i.l.bf16 %v2805_v18  ;;  %v2898_v18 = vld [vmem:[#allocation2 + $0x8] sm:$0xff] }
 0x890   : > { %v2813_v19 = vpack.i.bf16 %v2898_v18, %v2897_v17  ;;  %v1765_v17 = vld [vmem:[%s3459_s3] sm:$0xff]  ;;  %v1766_v18 = vld [vmem:[%s3459_s3 + $0x8] sm:$0xff] }
 0x891   : > { %v2573_v46 = vpack.c.bf16 %v2807_v47, %v2806_v2 }
 0x8cc   : > { %v1257_v20 = vpop.xlane.xlu0 %1256 }
 0x8cd   : > { %2873 = vrcp.f32 %v1257_v20  ;;  %v1254_v21 = vpop.xlane.xlu1 %1253 }
 0x8ce   : > { %2875 = vrcp.f32 %v1254_v21 }
 0x8d0   : > { %v2800_v22 = vpop.permute.xlu0 %2799 }
 0x8d1   : > { %v2802_v25 = vunpack.i.h.bf16 %v2800_v22  ;;  %v2801_v26 = vunpack.i.l.bf16 %v2800_v22  ;;  %v1396_v32 = vpop.permute.xlu1 %1395 }
 0x8d3   : > { %v2567_v3 = vpack.c.bf16 %v2802_v25, %v2801_v26 }
 0x8d7   : > { %v2874_v23 = vpop.eup %2873 }
 0x8d8   : > { %v2876_v24 = vpop.eup %2875  ;;  %v1267_v42 = vmul.f32 %v2874_v23, %v2866_v52 }
 0x8d9   : > { %v1265_v27 = vmul.f32 %v2876_v24, %v2868_v53 }
 0x8db   : > { %2369 = vmatprep.mubr.msk.f32.mxu1 %vm607_vm5, %v1265_v27 }
 0x8dc   : > { %2370 = vmatmul.mubr.msk.f32.vlgmr.msra.gmra.mrb[8].mxu1 %vm607_vm5, %v1267_v42 }
 0x8dd   : > { %2566 = vmatpush3.bf16.xpose.msk.msra.mxu1 %vm3088_vm3, %v2561_v15 }
 0x8de   : > { %2569 = vmatprep.subr.msk.bf16.mxu1 %vm3088_vm3, %v2567_v3 }
 0x8e5   : > { %2572 = vmatpush3.bf16.xpose.msk.msra.mxu1 %vm3088_vm3, %v2567_v3 }
 0x8e6   : > { %2575 = vmatprep.subr.msk.bf16.mxu1 %vm3088_vm3, %v2573_v46 }
 0x8ed   : > { %2578 = vmatpush3.bf16.xpose.msk.msra.mxu1 %vm3088_vm3, %v2573_v46 }
 0x8ee   : > { %2581 = vmatprep.subr.msk.bf16.mxu1 %vm3088_vm3, %v2579_v31 }
 0x8f5   : > { %2584 = vmatpush3.bf16.xpose.msk.msra.mxu1 %vm3088_vm3, %v2579_v31 }
 0x902   : > { %v1263_v34 = vpop.xlane.xlu0 %1262 }
 0x903   : > { %2877 = vrcp.f32 %v1263_v34  ;;  %v2899_v34 = vld [vmem:[#allocation2 + $0x20] sm:$0xff] }
 0x906   : > { %v1260_v35 = vpop.xlane.xlu1 %1259  ;;  %v1394_v39 = vpop.permute.xlu0 %1393 }
 0x907   : > { %2879 = vrcp.f32 %v1260_v35  ;;  %v2900_v35 = vld [vmem:[#allocation2 + $0x28] sm:$0xff] }
 0x90a   : > { %v1398_v43 = vpop.permute.xlu0 %1397  ;;  %v1400_v51 = vpop.permute.xlu1 %1399 }
 0x90d   : > { %v2878_v36 = vpop.eup %2877 }
 0x90e   : > { %v1271_v41 = vmul.f32 %v2878_v36, %v2870_v16  ;;  %v2823_v36 = vpack.i.bf16 %v2900_v35, %v2899_v34 }
 0x911   : > { %v2880_v37 = vpop.eup %2879 }
 0x912   : > { %v1269_v40 = vmul.f32 %v2880_v37, %v2872_v45  ;;  %v2901_v37 = vld [vmem:[#allocation2 + $0x10] sm:$0xff] }
 0x914   : > { %2372 = vmatprep.mubr.msk.f32.mxu1 %vm607_vm5, %v1269_v40 }
 0x915   : > { %2373 = vmatmul.mubr.msk.f32.gmra.mrb[10].mxu1 %vm607_vm5, %v1271_v41 }
 0x916   : > { %2391 = vmatprep.mubr.msk.f32.mxu1 %vm481_vm2, %v1394_v39  ;;  %v2902_v39 = vld [vmem:[#allocation2 + $0x18] sm:$0xff] }
 0x917   : > { %v2818_v40 = vpack.i.bf16 %v2902_v39, %v2901_v37 }
 0x919   : > { %2392 = vmatmul.mubr.msk.f32.vlgmr.msra.gmra.mrb[12].mxu1 %vm481_vm2, %v1396_v32 }
 0x91a   : > { %2394 = vmatprep.mubr.msk.f32.mxu1 %vm481_vm2, %v1398_v43 }
 0x91d   : > { %2395 = vmatmul.mubr.msk.f32.gmra.mrb[14].mxu1 %vm481_vm2, %v1400_v51 }
 0x9af   : > { %v3340_v44 = vpop.f32.mrb[8].mxu1 }
 0x9b0   : > { %v3342_v48 = vpop.f32.mrb[9].mxu1 }
 0x9e8   : > { %v3344_v49 = vpop.f32.mrb[10].mxu1 }
 0x9e9   : > { %v3346_v50 = vpop.f32.mrb[11].mxu1 }
 0x9ec   : > { %v2393_v38 = vpop.f32.mrb[12].mxu1 }
 0x9ed   : > { %v1527_v52 = vmul.f32 0.35355338, %v2393_v38  ;;  %v1507_v53 = vpop.f32.mrb[13].mxu1 }
 0x9ee   : > { %v1526_v54 = vmul.f32 0.35355338, %v1507_v53  ;;  %v2904_v53 = vld [vmem:[#allocation2 + $0x38] sm:$0xff] }
 0x9ef   : > { %v2090_v55 = vadd.f32 -10000.0, %v1527_v52 }
 0x9f0   : > { %v2089_v56 = vadd.f32 -10000.0, %v1526_v54  ;;  %v2396_v57 = vpop.f32.mrb[14].mxu1 }
 0x9f1   : > { %v1529_v60 = vmul.f32 0.35355338, %v2396_v57  ;;  %v1517_v6 = vpop.f32.mrb[15].mxu1  ;;  %v1535_v7 = vsel %vm454_vm4, %v2090_v55, %v1527_v52  ;;  %v2903_v52 = vld [vmem:[#allocation2 + $0x30] sm:$0xff] }
 0x9f2   : > { %v1528_v8 = vmul.f32 0.35355338, %v1517_v6  ;;  %v1541_v9 = vsel %vm607_vm5, %v1535_v7, -inf  ;;  %v1534_v10 = vsel %vm453_vm6, %v2089_v56, %v1526_v54  ;;  %v2828_v54 = vpack.i.bf16 %v2904_v53, %v2903_v52 }
 0x9f3   : > { %v2092_v11 = vadd.f32 -10000.0, %v1529_v60  ;;  %1542 = vmax.xlane.f32.xlu1 %v1541_v9  ;;  %v1538_v15 = vsel %vm607_vm5, %v1534_v10, -inf }
 0x9f4   : > { %v2091_v16 = vadd.f32 -10000.0, %v1528_v8  ;;  %1539 = vmax.xlane.f32.xlu0 %v1538_v15 }
 0x9f5   : > { %v1537_v12 = vsel %vm456_vm7, %v2092_v11, %v1529_v60 }
 0x9f6   : > { %v1536_v1 = vsel %vm455_vm8, %v2091_v16, %v1528_v8  ;;  %v1547_v14 = vsel %vm607_vm5, %v1537_v12, -inf }
 0x9f7   : > { %v1544_v45 = vsel %vm607_vm5, %v1536_v1, -inf }
 0x9f8   : > { %1545 = vmax.xlane.f32.xlu0 %v1544_v45 }
 0x9fc   : > { %1548 = vmax.xlane.f32.xlu0 %v1547_v14 }
 0xa04   : > { %2814 = vrot.lane.b32.xlu1 %v2813_v19, %s2955_s11  ;;  %v2601_v19 = vpack.c.bf16 %v1766_v18, %v1765_v17 }
 0xa06   : > { %2613 = vmatprep.subr.bf16.mxu1 %v2601_v19 }
 0xa07   : > { %2615 = vmatpush3.bf16.msra.mxu1 %v2601_v19 }
 0xa80   : > { %v1543_v20 = vpop.xlane.xlu1 %1542 }
 0xa81   : > { %v1551_v21 = vsub.f32 %v1535_v7, %v1543_v20  ;;  %v1540_v33 = vpop.xlane.xlu0 %1539  ;;  %v1767_v20 = vld [vmem:[%s3459_s3 + $0x10] sm:$0xff] }
 0xa82   : > { %v1550_v22 = vsub.f32 %v1534_v10, %v1540_v33 }
 0xa83   : > { %v1556_v23 = vmul.f32 1.442695, %v1551_v21  ;;  %v1768_v21 = vld [vmem:[%s3459_s3 + $0x18] sm:$0xff] }
 0xa84   : > { %v1554_v24 = vmul.f32 1.442695, %v1550_v22  ;;  %v2815_v13 = vpop.permute.xlu1 %2814  ;;  %v2605_v33 = vpack.c.bf16 %v1768_v21, %v1767_v20 }
 0xa85   : > { %2881 = vpow2.f32 %v1556_v23  ;;  %v1546_v29 = vpop.xlane.xlu0 %1545  ;;  %v2817_v25 = vunpack.i.h.bf16 %v2815_v13  ;;  %v2816_v26 = vunpack.i.l.bf16 %v2815_v13 }
 0xa86   : > { %2883 = vpow2.f32 %v1554_v24  ;;  %v1552_v41 = vsub.f32 %v1536_v1, %v1546_v29  ;;  %2614 = vmatprep.subr.bf16.mxu1 %v2605_v33 }
 0xa87   : > { %v2585_v27 = vpack.c.bf16 %v2817_v25, %v2816_v26  ;;  %2616 = vmatpush3.bf16.msra.mxu1 %v2605_v33 }
 0xa88   : > { %v1558_v43 = vmul.f32 1.442695, %v1552_v41 }
 0xa89   : > { %v1549_v42 = vpop.xlane.xlu0 %1548  ;;  %2586 = vmatprep.subr.bf16.mxu0 %v2585_v27 }
 0xa8a   : > { %v1553_v3 = vsub.f32 %v1537_v12, %v1549_v42  ;;  %2588 = vmatpush3.bf16.msra.mxu0 %v2585_v27 }
 0xa8c   : > { %v1560_v47 = vmul.f32 1.442695, %v1553_v3 }
 0xa8e   : > { %2885 = vpow2.f32 %v1560_v47 }
 0xa8f   : > { %v3365_v2 = vpop.eup %2881  ;;  %2887 = vpow2.f32 %v1558_v43 }
 0xa90   : > { %v2884_v46 = vpop.eup %2883  ;;  %v1565_v28 = vsel %vm607_vm5, %v3365_v2, 0.0 }
 0xa91   : > { %1566 = vadd.xlane.f32.xlu0 %v1565_v28  ;;  %v1562_v30 = vsel %vm607_vm5, %v2884_v46, 0.0 }
 0xa92   : > { %1563 = vadd.xlane.f32.xlu1 %v1562_v30 }
 0xa98   : > { %v3370_v31 = vpop.eup %2885 }
 0xa99   : > { %v1571_v32 = vsel %vm607_vm5, %v3370_v31, 0.0  ;;  %v2888_v51 = vpop.eup %2887 }
 0xa9a   : > { %1572 = vadd.xlane.f32.xlu0 %v1571_v32  ;;  %v1568_v38 = vsel %vm607_vm5, %v2888_v51, 0.0 }
 0xaa3   : > { %2824 = vrot.lane.b32.xlu1 %v2823_v36, %s2955_s11 }
 0xab0   : > { %2819 = vrot.lane.b32.xlu0 %v2818_v40, %s2955_s11 }
 0xab4   : > { %1707 = vrot.lane.b32.xlu0 %v3275_v59, %s2956_s12 }
 0xab8   : > { %1709 = vrot.lane.b32.xlu0 %v3273_v58, %s2956_s12 }
 0xabc   : > { %1723 = vrot.lane.b32.xlu0 %v3342_v48, %s2957_s13 }
 0xac0   : > { %1725 = vrot.lane.b32.xlu0 %v3340_v44, %s2957_s13 }
 0xac7   : > { %1569 = vadd.xlane.f32.xlu1 %v1568_v38 }
 0xad8   : > { %2829 = vrot.lane.b32.xlu1 %v2828_v54, %s2955_s11 }
 0xadc   : > { %1711 = vrot.lane.b32.xlu1 %v3279_v0, %s2956_s12 }
 0xae0   : > { %1713 = vrot.lane.b32.xlu1 %v3277_v61, %s2956_s12 }
 0xae4   : > { %1727 = vrot.lane.b32.xlu1 %v3346_v50, %s2957_s13 }
 0xae8   : > { %1729 = vrot.lane.b32.xlu1 %v3344_v49, %s2957_s13 }
 0xb1e   : > { %v1567_v59 = vpop.xlane.xlu0 %1566 }
 0xb1f   : > { %v1564_v58 = vpop.xlane.xlu1 %1563 }
 0xb20   : > { %2889 = vrcp.f32 %v1564_v58 }
 0xb21   : > { %2891 = vrcp.f32 %v1567_v59 }
 0xb23   : > { %v2825_v48 = vpop.permute.xlu1 %2824 }
 0xb24   : > { %v2827_v60 = vunpack.i.h.bf16 %v2825_v48  ;;  %v2826_v6 = vunpack.i.l.bf16 %v2825_v48 }
 0xb26   : > { %v2593_v61 = vpack.c.bf16 %v2827_v60, %v2826_v6 }
 0xb27   : > { %v1573_v44 = vpop.xlane.xlu0 %1572 }
 0xb2a   : > { %v2890_v55 = vpop.eup %2889 }
 0xb2b   : > { %v2820_v56 = vpop.permute.xlu0 %2819  ;;  %v1575_v57 = vmul.f32 %v2890_v55, %v2884_v46  ;;  %v2892_v15 = vpop.eup %2891 }
 0xb2c   : > { %v2822_v7 = vunpack.i.h.bf16 %v2820_v56  ;;  %v2821_v8 = vunpack.i.l.bf16 %v2820_v56  ;;  %v1577_v1 = vmul.f32 %v2892_v15, %v3365_v2 }
 0xb2d   : > { %2413 = vmatprep.mubr.msk.f32.mxu0 %vm607_vm5, %v1575_v57 }
 0xb2e   : > { %v2589_v0 = vpack.c.bf16 %v2822_v7, %v2821_v8 }
 0xb2f   : > { %v1708_v29 = vpop.permute.xlu0 %1707 }
 0xb30   : > { %2590 = vmatprep.subr.bf16.mxu0 %v2589_v0  ;;  %v1751_v2 = vsel %vm481_vm2, %v3207_v63, %v1708_v29 }
 0xb31   : > { %2592 = vmatpush3.bf16.msra.mxu0 %v2589_v0 }
 0xb32   : > { %2594 = vmatprep.subr.bf16.mxu0 %v2593_v61 }
 0xb33   : > { %v1710_v26 = vpop.permute.xlu0 %1709 }
 0xb34   : > { %v1752_v32 = vsel %vm481_vm2, %v3205_v62, %v1710_v26 }
 0xb35   : > { %2596 = vmatpush3.bf16.msra.mxu0 %v2593_v61 }
 0xb37   : > { %v1724_v42 = vpop.permute.xlu0 %1723 }
 0xb38   : > { %v1756_v46 = vsel %vm1755_vm9, %v1751_v2, %v1724_v42 }
 0xb3b   : > { %v1726_v47 = vpop.permute.xlu0 %1725 }
 0xb3c   : > { %v1757_v35 = vsel %vm1755_vm9, %v1752_v32, %v1726_v47 }
 0xb54   : > { %v1570_v49 = vpop.xlane.xlu1 %1569 }
 0xb55   : > { %2893 = vrcp.f32 %v1570_v49 }
 0xb56   : > { %2895 = vrcp.f32 %v1573_v44 }
 0xb58   : > { %v2830_v50 = vpop.permute.xlu1 %2829 }
 0xb59   : > { %v2832_v9 = vunpack.i.h.bf16 %v2830_v50  ;;  %v2831_v10 = vunpack.i.l.bf16 %v2830_v50 }
 0xb5b   : > { %v2597_v11 = vpack.c.bf16 %v2832_v9, %v2831_v10 }
 0xb5c   : > { %v1712_v25 = vpop.permute.xlu1 %1711 }
 0xb5d   : > { %2598 = vmatprep.subr.bf16.mxu0 %v2597_v11  ;;  %v1753_v34 = vsel %vm481_vm2, %v3211_v5, %v1712_v25 }
 0xb5e   : > { %2600 = vmatpush3.bf16.msra.mxu0 %v2597_v11 }
 0xb5f   : > { %v2894_v16 = vpop.eup %2893  ;;  %2602 = vmatprep.subr.bf16.mxu0 %v2601_v19 }
 0xb60   : > { %v2896_v12 = vpop.eup %2895  ;;  %v1579_v45 = vmul.f32 %v2894_v16, %v2888_v51  ;;  %v1714_v27 = vpop.permute.xlu1 %1713  ;;  %v2097_v51 = vld [vmem:[%s3460_s4] ss:$0 sm:$0xff] }
 0xb61   : > { %2414 = vmatmul.mubr.msk.f32.vlgmr.msra.gmra.mrb[12].mxu0 %vm607_vm5, %v1577_v1  ;;  %v1581_v14 = vmul.f32 %v2896_v12, %v3370_v31  ;;  %v1754_v62 = vsel %vm481_vm2, %v3209_v4, %v1714_v27 }
 0xb62   : > { %2416 = vmatprep.mubr.msk.f32.mxu0 %vm607_vm5, %v1579_v45  ;;  %2604 = vmatpush3.bf16.msra.mxu0 %v2601_v19 }
 0xb63   : > { %2606 = vmatprep.subr.bf16.mxu0 %v2605_v33 }
 0xb64   : > { %v1728_v3 = vpop.permute.xlu1 %1727 }
 0xb65   : > { %2417 = vmatmul.mubr.msk.f32.gmra.mrb[14].mxu0 %vm607_vm5, %v1581_v14  ;;  %v1758_v36 = vsel %vm1755_vm9, %v1753_v34, %v1728_v3 }
 0xb66   : > { %2608 = vmatpush3.bf16.msra.mxu0 %v2605_v33 }
 0xb68   : > { %v1730_v28 = vpop.permute.xlu1 %1729 }
 0xb69   : > { %v1759_v5 = vsel %vm1755_vm9, %v1754_v62, %v1730_v28 }
 0xc34   : > { %v2415_v22 = vpop.f32.mrb[12].mxu0 }
 0xc35   : > { %v1684_v23 = vpop.f32.mrb[13].mxu0 }
 0xc36   : > { %1739 = vrot.lane.b32.xlu0 %v1684_v23, %s2958_s29 }
 0xc38   : > { %v2418_v24 = vpop.f32.mrb[14].mxu0 }
 0xc39   : > { %v1694_v13 = vpop.f32.mrb[15].mxu0 }
 0xc3a   : > { %1741 = vrot.lane.b32.xlu0 %v2415_v22, %s2958_s29  ;;  %1743 = vrot.lane.b32.xlu1 %v1694_v13, %s2958_s29 }
 0xc3e   : > { %1745 = vrot.lane.b32.xlu1 %v2418_v24, %s2958_s29 }
 0xca8   : > { %v1740_v30 = vpop.permute.xlu0 %1739 }
 0xca9   : > { %v1761_v31 = vsel %vm1760_vm10, %v1756_v46, %v1740_v30 }
 0xcaa   : > { %2427 = vmatprep.mubr.msk.f32.mxu0 %vm1776_vm11, %v1761_v31 }
 0xcac   : > { %v1742_v63 = vpop.permute.xlu0 %1741  ;;  %v1744_v37 = vpop.permute.xlu1 %1743 }
 0xcad   : > { %v1762_v39 = vsel %vm1760_vm10, %v1757_v35, %v1742_v63  ;;  %v1763_v40 = vsel %vm1760_vm10, %v1758_v36, %v1744_v37 }
 0xcae   : > { %2428 = vmatmul.mubr.msk.f32.vlgmr.msra.gmra.mrb[16].mxu0 %vm1776_vm11, %v1762_v39  ;;  %2430 = vmatprep.mubr.msk.f32.mxu1 %vm1776_vm11, %v1763_v40 }
 0xcb0   : > { %v1746_v41 = vpop.permute.xlu1 %1745 }
 0xcb1   : > { %v1764_v43 = vsel %vm1760_vm10, %v1759_v5, %v1746_v41 }
 0xcb2   : > { %2431 = vmatmul.mubr.msk.f32.vlgmr.msra.gmra.mrb[16].mxu1 %vm1776_vm11, %v1764_v43 }
 0xd81   : > { %v2429_v38 = vpop.f32.mrb[16].mxu0 }
 0xd82   : > { %v1861_v52 = vadd.f32 %v2429_v38, %v2097_v51  ;;  %v1855_v53 = vpop.f32.mrb[17].mxu0 }
 0xd83   : > { %v1856_v54 = vadd.f32 %v2097_v51, %v1855_v53  ;;  %1882 = sbr.rel (%p2102_p7) target bundleno = 3615 (0xe1f), region = 48 }
 0xd84   : > { %1876 = vst.msk [vmem:[%s1874_s8 + $0x8] sm:$0xff] %vm1776_vm11, %v1861_v52 }
 0xd85   : > { %1875 = vst.msk [vmem:[%s1874_s8] sm:$0xff] %vm1776_vm11, %v1856_v54  ;;  %v2432_v4 = vpop.f32.mrb[16].mxu1 }
 0xd86   : > { %v1871_v58 = vadd.f32 %v2432_v4, %v2097_v51  ;;  %v1865_v59 = vpop.f32.mrb[17].mxu1 }
 0xd87   : > { %v1866_v44 = vadd.f32 %v2097_v51, %v1865_v59 }
 0xd88   : > { %1878 = vst.msk [vmem:[%s1874_s8 + $0x18] sm:$0xff] %vm1776_vm11, %v1871_v58 }
 0xd89   : > { %1877 = vst.msk [vmem:[%s1874_s8 + $0x10] sm:$0xff] %vm1776_vm11, %v1866_v44 }
 0xd90   : > { %v1883_v48 = vld [vmem:[#allocation3] sm:$0xff]  ;;  %v1884_v55 = vld [vmem:[#allocation3 + $0x8] sm:$0xff]  ;;  %v1885_v56 = vld [vmem:[#allocation3 + $0x10] sm:$0xff] }
 0xd91   : > { %1891 = vxpose.xlu0.b32.start [1/8] (short) (narrow) %v1883_v48, 32  ;;  %v1886_v57 = vld [vmem:[#allocation3 + $0x18] sm:$0xff]  ;;  %v1887_v60 = vld [vmem:[#allocation3 + $0x20] sm:$0xff]  ;;  %v1888_v6 = vld [vmem:[#allocation3 + $0x28] sm:$0xff] }
 0xd92   : > { %v1889_v7 = vld [vmem:[#allocation3 + $0x30] sm:$0xff]  ;;  %v1890_v8 = vld [vmem:[#allocation3 + $0x38] sm:$0xff] }
 0xd95   : > { %1892 = vxpose.xlu0.b32.cont [2/8] (short) (narrow) %v1884_v55, 32 }
 0xd99   : > { %1893 = vxpose.xlu0.b32.cont [3/8] (short) (narrow) %v1885_v56, 32 }
 0xd9d   : > { %1894 = vxpose.xlu0.b32.cont [4/8] (short) (narrow) %v1886_v57, 32 }
 0xda1   : > { %1895 = vxpose.xlu0.b32.cont [5/8] (short) (narrow) %v1887_v60, 32 }
 0xda5   : > { %1896 = vxpose.xlu0.b32.cont [6/8] (short) (narrow) %v1888_v6, 32 }
 0xda9   : > { %1897 = vxpose.xlu0.b32.cont [7/8] (short) (narrow) %v1889_v7, 32 }
 0xdad   : > { %1898 = vxpose.xlu0.b32.end [8/8] (short) (narrow) %v1890_v8, 32 }
 0xe11   : > { %v1907_v0 = vpop.trf.xlu0 }
 0xe12   : > { %1923 = vst.msk [vmem:[%s3027_s6] sm:$0xff] %vm607_vm5, %v1907_v0 }
 0xe15   : > { %v1908_v61 = vpop.trf.xlu0 }
 0xe16   : > { %1924 = vst.msk [vmem:[%s3027_s6 + $0x8] sm:$0xff] %vm607_vm5, %v1908_v61 }
 0xe19   : > { %v1909_v49 = vpop.trf.xlu0 }
 0xe1a   : > { %1925 = vst.msk [vmem:[%s3027_s6 + $0x10] sm:$0xff] %vm607_vm5, %v1909_v49 }
 0xe1d   : > { %v1910_v50 = vpop.trf.xlu0 }
 0xe1e   : > { %1926 = vst.msk [vmem:[%s3027_s6 + $0x18] sm:$0xff] %vm607_vm5, %v1910_v50 }
 0xe1f PF: > { %s15_s22 = sadd.s32 1, %s2943_s22   ;;  %s3464_s18 = smov %s2935_s20 }
 0xe20   : > { %p12_p8 = scmp.ge.s32.totalorder %s15_s22, 6   ;;  %s3465_s19 = smov %s2939_s21 }
 0xe21   : > { %s3466_s20 = smov %s3469_s23  ;;  %s3467_s21 = smov %s3473_s24 }
 0xe22   :  { %14 = sbr.rel (!%p12_p8) target bundleno = 3 (0x3), region = 80 }

</bundles_post_ra>
